<compile_context>
chip_gen: v6e
topology: v6e:2x2x1
jax: 0.10.0
libtpu: 0.0.40
codegen_flags: <defaults>
</compile_context>

<pallas_src>
import functools

import jax
import jax.numpy as jnp
from jax.experimental import pallas as pl
from jax.experimental.pallas import tpu as pltpu

_LN_EPS = 1e-5                  # torch.nn.LayerNorm default
_MXU_DTYPE = jnp.bfloat16       # MXU operand dtype; VPU/EUP math stays f32
_ACT_DTYPE = jnp.bfloat16       # inter-kernel activation streaming dtype
_LANE = 128                     # lane-dense feature padding target
_TILE_M = 2048                  # max token rows per grid step
_VMEM_LIMIT = 32 * 1024 * 1024  # scoped VMEM budget (safe on v5e/v6e/v7x)
_MAX_FUSED_GROUPS = 64          # unroll guard for the fused whole-net kernel


def _round_up(x, m):
    return ((x + m - 1) // m) * m


def _compiler_params():
    return pltpu.CompilerParams(dimension_semantics=("parallel",),
                                vmem_limit_bytes=_VMEM_LIMIT)


def _choose_tile(rows, stream_row_bytes, live_row_bytes=0, weight_bytes=0):
    """Token-tile chooser: as fat as the VMEM budget allows (double-buffered
    streams + live activations + resident weights), capped at _TILE_M, and
    kept to >= 2 grid steps whenever possible so v7x's two TensorCores both
    get work.  Multiple of 8 rows (sublane constraint)."""
    budget = _VMEM_LIMIT - weight_bytes - (4 << 20)
    per_row = 2 * stream_row_bytes + live_row_bytes
    t_vmem = max(8, budget // max(per_row, 1))
    t = min(_TILE_M, t_vmem, _round_up(max(rows, 8), 8))
    if rows > 8:
        t = min(t, _round_up(-(-rows // 2), 8))   # ceil(rows/2) -> >=2 steps
    return max(8, (t // 8) * 8)


def _pad_rows(x2, tile):
    rows = x2.shape[0]
    rp = _round_up(max(rows, tile), tile)
    if rp != rows:
        x2 = jnp.pad(x2, ((0, rp - rows), (0, 0)))
    return x2


# ---------------------------------------------------------------------------
# Shared in-kernel math
# ---------------------------------------------------------------------------
def _layernorm(h, gamma, beta, d_real):
    """One-pass LayerNorm over the real feature width d_real.

    Feature columns >= d_real are exactly zero everywhere (weights / bias /
    gamma / beta zero-padded), so full-width sums equal real-width sums and
    padded lanes stay exactly 0."""
    inv_d = 1.0 / float(d_real)
    mu = jnp.sum(h, axis=-1, keepdims=True) * inv_d
    ms = jnp.sum(h * h, axis=-1, keepdims=True) * inv_d
    var = jnp.maximum(ms - mu * mu, 0.0)
    return (h - mu) * jax.lax.rsqrt(var + _LN_EPS) * gamma + beta


def _split_vec(vec_ref):
    """(8, Dp) packed vector table -> (b1, g1, be1, b2, g2, be2, bproj)."""
    vec = vec_ref[...]
    return tuple(vec[r:r + 1, :] for r in range(7))


def _block_body(x, wcat, w2, vecs, d_out, dp_out, need_projection):
    """ResidualBlock core: [proj |] linear1 -> LN -> ReLU -> linear2 -> LN
    -> +residual -> ReLU.  MXU operands bf16, accumulation & VPU math f32."""
    b1, g1, be1, b2, g2, be2, bproj = vecs
    y = jnp.dot(x.astype(_MXU_DTYPE), wcat, preferred_element_type=jnp.float32)
    if need_projection:                       # projection fused in first dot
        h = y[:, :dp_out] + b1
        residual = y[:, dp_out:] + bproj
    else:
        h = y + b1
        residual = x.astype(jnp.float32)
    h = jnp.maximum(_layernorm(h, g1, be1, d_out), 0.0)
    h = jnp.dot(h.astype(_MXU_DTYPE), w2, preferred_element_type=jnp.float32) + b2
    h = _layernorm(h, g2, be2, d_out)
    return jnp.maximum(h + residual, 0.0)


# ---------------------------------------------------------------------------
# Fused whole-network kernel (primary path)
# ---------------------------------------------------------------------------
def _fused_net_kernel(*refs, n_w, g0, d0, dp0, blocks, shortcuts):
    """One grid step = one tile of 'final-level' token rows.  Each row packs
    2^P consecutive seq positions along lanes; every MaxPool is an
    elementwise max of two adjacent lane groups (no relayout)."""
    x_ref = refs[0]
    w = refs[1:1 + n_w]
    out_refs = refs[1 + n_w:]

    # Stage 0 = network input, g0 lane-groups of padded width dp0 (bf16).
    in_groups = [x_ref[:, g * dp0:(g + 1) * dp0] for g in range(g0)]
    stages = [(in_groups, d0)]                # mirrors PyTorch shortcut_outputs

    for i, bm in enumerate(blocks):
        d_out, dp_out = bm['d_out'], bm['dp_out']
        wcat = w[bm['w_idx']][...]
        w2 = w[bm['w_idx'] + 1][...]
        vecs = _split_vec(w[bm['w_idx'] + 2])  # hoisted out of the group loop

        groups = [_block_body(xg, wcat, w2, vecs, d_out, dp_out,
                              bm['need_projection'])
                  for xg in stages[i][0]]
        if bm['downsample']:                   # MaxPool1d(2,2) along seq
            groups = [jnp.maximum(groups[2 * k], groups[2 * k + 1])
                      for k in range(len(groups) // 2)]

        if i > 0:
            sc = shortcuts[i - 1]
            sidx = i - 2 if i > 1 else 0
            sc_groups, sc_d = stages[sidx]
            n_sc, d_sc = len(sc_groups), sc_d
            if sc is not None:
                if sc['has_proj']:
                    d_sc = sc['proj_d']
                if sc['pool']:
                    n_sc //= 2
            # Only materialize the shortcut when its (static) shape matches
            # the block output; PyTorch discards it otherwise.
            if n_sc == len(groups) and d_sc == d_out:
                if sc is not None and sc['has_proj']:
                    pw = w[sc['w_idx']][...]
                    pb = w[sc['w_idx'] + 1][...]
                    sc_groups = [jnp.dot(g_.astype(_MXU_DTYPE), pw,
                                         preferred_element_type=jnp.float32) + pb
                                 for g_ in sc_groups]
                if sc is not None and sc['pool']:
                    sc_groups = [jnp.maximum(sc_groups[2 * k], sc_groups[2 * k + 1])
                                 for k in range(len(sc_groups) // 2)]
                groups = [a + b.astype(jnp.float32)
                          for a, b in zip(groups, sc_groups)]

        stages.append((groups, d_out))
        oref = out_refs[i]                     # lane-packed, f32 (returned)
        for g, og in enumerate(groups):
            oref[:, g * dp_out:(g + 1) * dp_out] = og.astype(oref.dtype)


def _fused_forward(params, x):
    blocks, shortcuts = params['blocks'], params['shortcuts']
    B, S, _ = x.shape
    d0, dp0 = blocks[0]['d_in'], blocks[0]['dp_in']
    P = sum(1 for b in blocks if b['downsample'])
    G = 1 << P

    # Lane-dense feature pad, bf16 stream, pack G seq positions per row (free).
    pad = dp0 - x.shape[2]
    if pad:
        x = jnp.pad(x, ((0, 0), (0, 0), (0, pad)))
    x2 = x.astype(_ACT_DTYPE).reshape(B * S // G, G * dp0)
    rows_f = x2.shape[0]

    # Flat resident-weight list + static metadata.
    weights, blk_meta, sc_meta = [], [], []
    n_groups = G
    for bp in blocks:
        w_idx = len(weights)
        weights += [bp['wcat'], bp['w2'], bp['vec']]
        n_out = n_groups // 2 if bp['downsample'] else n_groups
        blk_meta.append(dict(w_idx=w_idx, d_out=bp['d_out'], dp_out=bp['dp_out'],
                             need_projection=bp['need_projection'],
                             downsample=bp['downsample'], n_groups_out=n_out))
        n_groups = n_out
    for sc in shortcuts:
        if sc is None:
            sc_meta.append(None)
        else:
            m = dict(pool=sc['pool'], has_proj='proj_w' in sc, w_idx=-1,
                     proj_d=sc.get('proj_d', -1))
            if m['has_proj']:
                m['w_idx'] = len(weights)
                weights += [sc['proj_w'], sc['proj_b']]
            sc_meta.append(m)

    out_widths = [m['n_groups_out'] * m['dp_out'] for m in blk_meta]
    in_row_bytes = G * dp0 * 2
    out_row_bytes = sum(w_ * 4 for w_ in out_widths)
    live_row_bytes = (G * dp0 + sum(out_widths)) * 4
    w_bytes = sum(int(w_.size) * w_.dtype.itemsize for w_ in weights)
    tile = _choose_tile(rows_f, in_row_bytes + out_row_bytes,
                        live_row_bytes, w_bytes)
    x2 = _pad_rows(x2, tile)
    rows_fp = x2.shape[0]

    kernel = functools.partial(_fused_net_kernel, n_w=len(weights), g0=G,
                               d0=d0, dp0=dp0, blocks=blk_meta,
                               shortcuts=sc_meta)

    in_specs = [pl.BlockSpec((tile, G * dp0), lambda t: (t, 0))]
    in_specs += [pl.BlockSpec(w_.shape, lambda t: (0, 0)) for w_ in weights]
    out_shape = [jax.ShapeDtypeStruct((rows_fp, w_), jnp.float32)
                 for w_ in out_widths]
    out_specs = [pl.BlockSpec((tile, w_), lambda t: (t, 0)) for w_ in out_widths]

    outs = pl.pallas_call(
        kernel,
        out_shape=out_shape,
        grid=(rows_fp // tile,),
        in_specs=in_specs,
        out_specs=out_specs,
        compiler_params=_compiler_params(),
    )(x2, *weights)

    outputs = []
    for o, m in zip(outs, blk_meta):
        n_g, dp, d = m['n_groups_out'], m['dp_out'], m['d_out']
        rows_l = rows_f * n_g
        o = o[:rows_f].reshape(rows_l, dp)[:, :d].reshape(B, rows_l // B, d)
        outputs.append(o)
    return outputs[-1], outputs


# ---------------------------------------------------------------------------
# Per-block fallback kernels (non-divisible / odd sequence lengths)
# ---------------------------------------------------------------------------
def _resblock_kernel(x_ref, wcat_ref, w2_ref, vec_ref, o_ref, *,
                     d_out, dp_in, dp_out, need_projection, fuse_pool):
    wcat = wcat_ref[...]
    w2 = w2_ref[...]
    vecs = _split_vec(vec_ref)           # hoisted: shared by both pool halves
    if fuse_pool:
        a = _block_body(x_ref[:, :dp_in], wcat, w2, vecs, d_out, dp_out,
                        need_projection)
        b = _block_body(x_ref[:, dp_in:], wcat, w2, vecs, d_out, dp_out,
                        need_projection)
        o_ref[...] = jnp.maximum(a, b).astype(o_ref.dtype)
    else:
        o_ref[...] = _block_body(x_ref[...], wcat, w2, vecs, d_out, dp_out,
                                 need_projection).astype(o_ref.dtype)


def _linear_kernel(x_ref, w_ref, b_ref, o_ref):
    o_ref[...] = (jnp.dot(x_ref[...].astype(_MXU_DTYPE), w_ref[...],
                          preferred_element_type=jnp.float32)
                  + b_ref[...]).astype(o_ref.dtype)


def _pool_kernel(x_ref, o_ref):
    dp = o_ref.shape[1]
    x = x_ref[...]
    o_ref[...] = jnp.maximum(x[:, :dp], x[:, dp:])


def residual_block_forward(p, x):
    """Fallback ResidualBlock.  x: (B, S, dp_in) bf16, feature-padded."""
    B, S, dp_in = x.shape
    d_out, dp_out = p['d_out'], p['dp_out']
    fuse_pool = p['downsample']

    if fuse_pool:
        T = S // 2
        if S % 2:
            x = x[:, :2 * T, :]              # MaxPool1d floors the odd tail
        rows = B * T
        x2 = x.reshape(rows, 2 * dp_in)      # seq pairs along lanes (free)
    else:
        rows = B * S
        x2 = x.reshape(rows, dp_in)

    w_bytes = sum(int(a.size) * a.dtype.itemsize
                  for a in (p['wcat'], p['w2'], p['vec']))
    tile = _choose_tile(rows, (x2.shape[1] + dp_out) * x2.dtype.itemsize,
                        weight_bytes=w_bytes)
    x2 = _pad_rows(x2, tile)
    rows_p, in_cols = x2.shape

    kernel = functools.partial(
        _resblock_kernel, d_out=d_out, dp_in=dp_in, dp_out=dp_out,
        need_projection=p['need_projection'], fuse_pool=fuse_pool)

    out = pl.pallas_call(
        kernel,
        out_shape=jax.ShapeDtypeStruct((rows_p, dp_out), x.dtype),
        grid=(rows_p // tile,),
        in_specs=[pl.BlockSpec((tile, in_cols), lambda i: (i, 0)),
                  pl.BlockSpec(p['wcat'].shape, lambda i: (0, 0)),
                  pl.BlockSpec(p['w2'].shape, lambda i: (0, 0)),
                  pl.BlockSpec(p['vec'].shape, lambda i: (0, 0))],
        out_specs=pl.BlockSpec((tile, dp_out), lambda i: (i, 0)),
        compiler_params=_compiler_params(),
    )(x2, p['wcat'], p['w2'], p['vec'])

    out = out[:rows]
    return out.reshape(B, T if fuse_pool else S, dp_out)


def linear_apply(w, b, x):
    B, S, dp_in = x.shape
    dp_out = w.shape[1]
    rows = B * S
    x2 = x.reshape(rows, dp_in)
    tile = _choose_tile(rows, (dp_in + dp_out) * x.dtype.itemsize,
                        weight_bytes=int(w.size) * w.dtype.itemsize)
    x2 = _pad_rows(x2, tile)
    rows_p = x2.shape[0]
    out = pl.pallas_call(
        _linear_kernel,
        out_shape=jax.ShapeDtypeStruct((rows_p, dp_out), x.dtype),
        grid=(rows_p // tile,),
        in_specs=[pl.BlockSpec((tile, dp_in), lambda i: (i, 0)),
                  pl.BlockSpec(w.shape, lambda i: (0, 0)),
                  pl.BlockSpec(b.shape, lambda i: (0, 0))],
        out_specs=pl.BlockSpec((tile, dp_out), lambda i: (i, 0)),
        compiler_params=_compiler_params(),
    )(x2, w, b)
    return out[:rows].reshape(B, S, dp_out)


def maxpool1d_seq(x):
    B, S, dp = x.shape
    T = S // 2
    if S % 2:
        x = x[:, :2 * T, :]
    rows = B * T
    x2 = x.reshape(rows, 2 * dp)
    tile = _choose_tile(rows, 3 * dp * x.dtype.itemsize)
    x2 = _pad_rows(x2, tile)
    rows_p = x2.shape[0]
    out = pl.pallas_call(
        _pool_kernel,
        out_shape=jax.ShapeDtypeStruct((rows_p, dp), x.dtype),
        grid=(rows_p // tile,),
        in_specs=[pl.BlockSpec((tile, 2 * dp), lambda i: (i, 0))],
        out_specs=pl.BlockSpec((tile, dp), lambda i: (i, 0)),
        compiler_params=_compiler_params(),
    )(x2)
    return out[:rows].reshape(B, T, dp)


def _blockwise_forward(params, x):
    """Fallback: one pallas_call per block, bf16 activation streaming."""
    blocks, shortcuts = params['blocks'], params['shortcuts']
    d0, dp0 = blocks[0]['d_in'], blocks[0]['dp_in']
    pad = dp0 - x.shape[2]
    if pad:
        x = jnp.pad(x, ((0, 0), (0, 0), (0, pad)))
    x = x.astype(_ACT_DTYPE)

    outputs_padded = []
    stages = [(x, d0)]                        # mirrors PyTorch shortcut_outputs
    for i, bp in enumerate(blocks):
        if i == 0:
            x = residual_block_forward(bp, x)
        else:
            block_output = residual_block_forward(bp, x)
            sidx = i - 2 if i > 1 else 0
            sc_in, sc_d = stages[sidx]
            sc = shortcuts[i - 1]
            seq_sc, d_sc = sc_in.shape[1], sc_d
            if sc is not None:
                if 'proj_w' in sc:
                    d_sc = sc['proj_d']
                if sc['pool']:
                    seq_sc //= 2
            if seq_sc == block_output.shape[1] and d_sc == bp['d_out']:
                sc_out = sc_in
                if sc is not None and 'proj_w' in sc:
                    sc_out = linear_apply(sc['proj_w'], sc['proj_b'], sc_out)
                if sc is not None and sc['pool']:
                    sc_out = maxpool1d_seq(sc_out)
                x = block_output + sc_out
            else:
                x = block_output
        outputs_padded.append((x, bp['d_out']))
        stages.append((x, bp['d_out']))

    outputs = [o[..., :d].astype(jnp.float32) for (o, d) in outputs_padded]
    return outputs[-1], outputs


# ---------------------------------------------------------------------------
# Top-level forward (dispatch)
# ---------------------------------------------------------------------------
def residual_network_forward(params, x):
    """Mirrors ResidualNetwork.forward.  x: (B, S, residual_blocks[0]) f32."""
    blocks = params['blocks']
    S = x.shape[1]
    P = sum(1 for b in blocks if b['downsample'])
    G = 1 << P
    n_groups_total = sum(
        G >> sum(1 for b in blocks[:i] if b['downsample'])
        for i in range(len(blocks)))
    fusable = (S % G == 0) and (S > 0) and (n_groups_total <= _MAX_FUSED_GROUPS)
    if fusable:
        return _fused_forward(params, x)
    # TODO(synk): odd / non-divisible seq lengths break the free lane-packed
    # pooling layout; fall back to per-block kernels in that case.
    return _blockwise_forward(params, x)


# ---------------------------------------------------------------------------
# Deterministic parameter construction (mirrors the module __init__ shapes)
# ---------------------------------------------------------------------------
def _init_linear(key, din, dout):
    k1, k2 = jax.random.split(key)
    bound = 1.0 / (din ** 0.5)
    w = jax.random.uniform(k1, (din, dout), jnp.float32, -bound, bound)
    b = jax.random.uniform(k2, (dout,), jnp.float32, -bound, bound)
    return w, b


def _pad_mat(w, rp, cp):
    r, c = w.shape
    return jnp.pad(w, ((0, rp - r), (0, cp - c)))


def _pad_vec(v, cp):
    return jnp.pad(v, (0, cp - v.shape[0]))


def _init_block(key, d_in, d_out, downsample):
    dp_in, dp_out = _round_up(d_in, _LANE), _round_up(d_out, _LANE)
    ks = jax.random.split(key, 7)
    need_projection = d_in != d_out

    w1, b1 = _init_linear(ks[0], d_in, d_out)
    w2, b2 = _init_linear(ks[1], d_out, d_out)
    g1 = jax.random.uniform(ks[2], (d_out,), jnp.float32, 0.5, 1.5)
    be1 = jax.random.uniform(ks[3], (d_out,), jnp.float32, -0.1, 0.1)
    g2 = jax.random.uniform(ks[4], (d_out,), jnp.float32, 0.5, 1.5)
    be2 = jax.random.uniform(ks[5], (d_out,), jnp.float32, -0.1, 0.1)

    w1p = _pad_mat(w1, dp_in, dp_out)
    if need_projection:
        wp, bproj = _init_linear(ks[6], d_in, d_out)
        wcat = jnp.concatenate([w1p, _pad_mat(wp, dp_in, dp_out)], axis=1)
    else:
        bproj = jnp.zeros((d_out,), jnp.float32)
        wcat = w1p

    vec = jnp.stack([
        _pad_vec(b1, dp_out), _pad_vec(g1, dp_out), _pad_vec(be1, dp_out),
        _pad_vec(b2, dp_out), _pad_vec(g2, dp_out), _pad_vec(be2, dp_out),
        _pad_vec(bproj, dp_out), jnp.zeros((dp_out,), jnp.float32)], axis=0)

    return {'d_in': d_in, 'd_out': d_out, 'dp_in': dp_in, 'dp_out': dp_out,
            'downsample': downsample, 'need_projection': need_projection,
            'wcat': wcat.astype(_MXU_DTYPE),
            'w2': _pad_mat(w2, dp_out, dp_out).astype(_MXU_DTYPE),
            'vec': vec}


def build_residual_network(key, residual_blocks):
    n = len(residual_blocks)
    keys = jax.random.split(key, 2 * n + 2)
    blocks, shortcuts = [], []
    for i in range(n):
        d_in = residual_blocks[i - 1] if i > 0 else residual_blocks[0]
        d_out = residual_blocks[i]
        downsample = (i % 2 == 0)
        blocks.append(_init_block(keys[i], d_in, d_out, downsample))
        if i > 0:
            need_projection = (residual_blocks[i - 2] != residual_blocks[i]
                               if i > 1 else
                               residual_blocks[0] != residual_blocks[i])
            need_downsample = (i % 2 == 0) and ((i - 1) % 2 == 1)
            if need_projection or need_downsample:
                sc = {'pool': need_downsample}
                if need_projection:
                    s_in = residual_blocks[i - 2] if i > 1 else residual_blocks[0]
                    s_out = residual_blocks[i]
                    w, b = _init_linear(keys[n + i], s_in, s_out)
                    sp_in = _round_up(s_in, _LANE)
                    sp_out = _round_up(s_out, _LANE)
                    sc['proj_w'] = _pad_mat(w, sp_in, sp_out).astype(_MXU_DTYPE)
                    sc['proj_b'] = _pad_vec(b, sp_out).reshape(1, sp_out)
                    sc['proj_in'] = s_in
                    sc['proj_d'] = s_out
                    sc['proj_dp'] = sp_out
                shortcuts.append(sc)
            else:
                shortcuts.append(None)
    return {'blocks': blocks, 'shortcuts': shortcuts}


# ---------------------------------------------------------------------------
# Pure-JAX f32 reference (same bf16-rounded weight values) for sanity checks
# ---------------------------------------------------------------------------
def _reference_forward(params, x):
    blocks, shortcuts = params['blocks'], params['shortcuts']

    def ln(h, g, b):
        mu = jnp.mean(h, axis=-1, keepdims=True)
        var = jnp.mean((h - mu) ** 2, axis=-1, keepdims=True)
        return (h - mu) * jax.lax.rsqrt(var + _LN_EPS) * g + b

    def pool_seq(o):
        Bb, Ss, Dd = o.shape
        return o[:, :2 * (Ss // 2), :].reshape(Bb, Ss // 2, 2, Dd).max(axis=2)

    def block_fwd(bp, x):
        d_in, d_out, dp_out = bp['d_in'], bp['d_out'], bp['dp_out']
        wcat = bp['wcat'].astype(jnp.float32)
        w1 = wcat[:d_in, :d_out]
        w2 = bp['w2'].astype(jnp.float32)[:d_out, :d_out]
        v = bp['vec']
        residual = x
        if bp['need_projection']:
            residual = x @ wcat[:d_in, dp_out:dp_out + d_out] + v[6, :d_out]
        h = x @ w1 + v[0, :d_out]
        h = jnp.maximum(ln(h, v[1, :d_out], v[2, :d_out]), 0.0)
        h = h @ w2 + v[3, :d_out]
        h = ln(h, v[4, :d_out], v[5, :d_out])
        out = jnp.maximum(h + residual, 0.0)
        return pool_seq(out) if bp['downsample'] else out

    outputs, sc_outs = [], [x]
    for i, bp in enumerate(blocks):
        if i == 0:
            x = block_fwd(bp, x)
        else:
            sidx = i - 2 if i > 1 else 0
            so = sc_outs[sidx]
            sc = shortcuts[i - 1]
            if sc is not None:
                if 'proj_w' in sc:
                    pw = sc['proj_w'].astype(jnp.float32)[:sc['proj_in'], :sc['proj_d']]
                    so = so @ pw + sc['proj_b'][0, :sc['proj_d']]
                if sc['pool']:
                    so = pool_seq(so)
            bo = block_fwd(bp, x)
            x = bo + so if so.shape == bo.shape else bo
        outputs.append(x)
        sc_outs.append(x)
    return x, outputs


# ---------------------------------------------------------------------------
if __name__ == "__main__":
    key = jax.random.PRNGKey(0)
    k_params, k_x1, k_x2 = jax.random.split(key, 3)

    residual_blocks = [32, 64, 32]
    params = build_residual_network(k_params, residual_blocks)
    forward = jax.jit(functools.partial(residual_network_forward, params))

    # Small shapes consistent with the module (fused whole-network kernel).
    B, S = 2, 16
    x = jax.random.normal(k_x1, (B, S, residual_blocks[0]), jnp.float32)
    final, outputs = forward(x)
    jax.block_until_ready(final)
    assert final.shape == (2, 4, 32), final.shape
    assert [o.shape for o in outputs] == [(2, 8, 32), (2, 8, 64), (2, 4, 32)]
    ref_final, ref_outs = _reference_forward(params, x)
    for got, want in zip(outputs, ref_outs):
        err = float(jnp.max(jnp.abs(got - want)))
        assert err < 0.15, f"fused path mismatch: {err}"

    # Larger token count: multi-step pipelined grid; >=2 steps so both v7x
    # TensorCores get work via dimension_semantics=("parallel",).
    B2, S2 = 4, 512
    x2 = jax.random.normal(k_x2, (B2, S2, residual_blocks[0]), jnp.float32)
    final2, _ = forward(x2)
    jax.block_until_ready(final2)
    assert final2.shape == (4, 128, 32), final2.shape

    # Odd sequence length exercises the per-block fallback path
    # (MaxPool1d floor breaks the free lane-packed pooling layout).
    x3 = jax.random.normal(k_x1, (2, 18, residual_blocks[0]), jnp.float32)
    final3, outputs3 = forward(x3)
    jax.block_until_ready(final3)
    assert final3.shape == (2, 4, 32), final3.shape
    ref_final3, ref_outs3 = _reference_forward(params, x3)
    for got, want in zip(outputs3, ref_outs3):
        err = float(jnp.max(jnp.abs(got - want)))
        assert err < 0.15, f"fallback path mismatch: {err}"

    print("KERNEL_OK")
</pallas_src>

<mosaic_0001>
module attributes {stable_mosaic.version = 11 : i64} {
  func.func @_fused_net_kernel(%arg0: i32, %arg1: memref<8x512xbf16, #tpu.memory_space<vmem>>, %arg2: memref<128x128xbf16, #tpu.memory_space<vmem>>, %arg3: memref<128x128xbf16, #tpu.memory_space<vmem>>, %arg4: memref<8x128xf32, #tpu.memory_space<vmem>>, %arg5: memref<128x256xbf16, #tpu.memory_space<vmem>>, %arg6: memref<128x128xbf16, #tpu.memory_space<vmem>>, %arg7: memref<8x128xf32, #tpu.memory_space<vmem>>, %arg8: memref<128x256xbf16, #tpu.memory_space<vmem>>, %arg9: memref<128x128xbf16, #tpu.memory_space<vmem>>, %arg10: memref<8x128xf32, #tpu.memory_space<vmem>>, %arg11: memref<128x128xbf16, #tpu.memory_space<vmem>>, %arg12: memref<1x128xf32, #tpu.memory_space<vmem>>, %arg13: memref<8x256xf32, #tpu.memory_space<vmem>>, %arg14: memref<8x256xf32, #tpu.memory_space<vmem>>, %arg15: memref<8x128xf32, #tpu.memory_space<vmem>>) attributes {dimension_semantics = [#tpu.dimension_semantics<parallel>], iteration_bounds = array<i64: 1>, scalar_prefetch = 0 : i64, scratch_operands = 0 : i64, tpu.core_type = #tpu.core_type<tc>, window_params = [{transform_indices = @transform_0, window_bounds = array<i64: 8, 512>}, {pipeline_mode = #tpu.pipeline_mode<synchronous>, transform_indices = @transform_1, window_bounds = array<i64: 128, 128>}, {pipeline_mode = #tpu.pipeline_mode<synchronous>, transform_indices = @transform_2, window_bounds = array<i64: 128, 128>}, {pipeline_mode = #tpu.pipeline_mode<synchronous>, transform_indices = @transform_3, window_bounds = array<i64: 8, 128>}, {pipeline_mode = #tpu.pipeline_mode<synchronous>, transform_indices = @transform_4, window_bounds = array<i64: 128, 256>}, {pipeline_mode = #tpu.pipeline_mode<synchronous>, transform_indices = @transform_5, window_bounds = array<i64: 128, 128>}, {pipeline_mode = #tpu.pipeline_mode<synchronous>, transform_indices = @transform_6, window_bounds = array<i64: 8, 128>}, {pipeline_mode = #tpu.pipeline_mode<synchronous>, transform_indices = @transform_7, window_bounds = array<i64: 128, 256>}, {pipeline_mode = #tpu.pipeline_mode<synchronous>, transform_indices = @transform_8, window_bounds = array<i64: 128, 128>}, {pipeline_mode = #tpu.pipeline_mode<synchronous>, transform_indices = @transform_9, window_bounds = array<i64: 8, 128>}, {pipeline_mode = #tpu.pipeline_mode<synchronous>, transform_indices = @transform_10, window_bounds = array<i64: 128, 128>}, {pipeline_mode = #tpu.pipeline_mode<synchronous>, transform_indices = @transform_11, window_bounds = array<i64: 1, 128>}, {transform_indices = @transform_12, window_bounds = array<i64: 8, 256>}, {transform_indices = @transform_13, window_bounds = array<i64: 8, 256>}, {transform_indices = @transform_14, window_bounds = array<i64: 8, 128>}]} {
    %c0 = arith.constant 0 : index
    %c0_0 = arith.constant 0 : index
    %0 = vector.load %arg1[%c0, %c0_0] : memref<8x512xbf16, #tpu.memory_space<vmem>>, vector<8x128xbf16>
    %c0_1 = arith.constant 0 : index
    %c128 = arith.constant 128 : index
    %1 = vector.load %arg1[%c0_1, %c128] : memref<8x512xbf16, #tpu.memory_space<vmem>>, vector<8x128xbf16>
    %c0_2 = arith.constant 0 : index
    %c256 = arith.constant 256 : index
    %2 = vector.load %arg1[%c0_2, %c256] : memref<8x512xbf16, #tpu.memory_space<vmem>>, vector<8x128xbf16>
    %c0_3 = arith.constant 0 : index
    %c384 = arith.constant 384 : index
    %3 = vector.load %arg1[%c0_3, %c384] : memref<8x512xbf16, #tpu.memory_space<vmem>>, vector<8x128xbf16>
    %c0_4 = arith.constant 0 : index
    %c0_5 = arith.constant 0 : index
    %4 = vector.load %arg2[%c0_4, %c0_5] : memref<128x128xbf16, #tpu.memory_space<vmem>>, vector<128x128xbf16>
    %c0_6 = arith.constant 0 : index
    %c0_7 = arith.constant 0 : index
    %5 = vector.load %arg3[%c0_6, %c0_7] : memref<128x128xbf16, #tpu.memory_space<vmem>>, vector<128x128xbf16>
    %c0_8 = arith.constant 0 : index
    %c0_9 = arith.constant 0 : index
    %6 = vector.load %arg4[%c0_8, %c0_9] : memref<8x128xf32, #tpu.memory_space<vmem>>, vector<8x128xf32>
    %7 = vector.extract_strided_slice %6 {offsets = [0, 0], sizes = [1, 128], strides = [1, 1]} : vector<8x128xf32> to vector<1x128xf32>
    %8 = vector.extract_strided_slice %6 {offsets = [1, 0], sizes = [1, 128], strides = [1, 1]} : vector<8x128xf32> to vector<1x128xf32>
    %9 = vector.extract_strided_slice %6 {offsets = [2, 0], sizes = [1, 128], strides = [1, 1]} : vector<8x128xf32> to vector<1x128xf32>
    %10 = vector.extract_strided_slice %6 {offsets = [3, 0], sizes = [1, 128], strides = [1, 1]} : vector<8x128xf32> to vector<1x128xf32>
    %11 = vector.extract_strided_slice %6 {offsets = [4, 0], sizes = [1, 128], strides = [1, 1]} : vector<8x128xf32> to vector<1x128xf32>
    %12 = vector.extract_strided_slice %6 {offsets = [5, 0], sizes = [1, 128], strides = [1, 1]} : vector<8x128xf32> to vector<1x128xf32>
    %cst = arith.constant dense<0.000000e+00> : vector<8x128xf32>
    %13 = tpu.matmul %0, %4, %cst {dimension_numbers = #tpu.dot_dimension_numbers<[1], [0], [0], [1], [0, 0, 1, 1], [], []>} : vector<8x128xbf16>, vector<128x128xbf16>, vector<8x128xf32> -> vector<8x128xf32>
    %14 = vector.broadcast %7 : vector<1x128xf32> to vector<8x128xf32>
    %15 = arith.addf %13, %14 : vector<8x128xf32>
    %16 = arith.extf %0 : vector<8x128xbf16> to vector<8x128xf32>
    %cst_10 = arith.constant dense<0.000000e+00> : vector<8xf32>
    %17 = vector.multi_reduction <add>, %15, %cst_10 [1] : vector<8x128xf32> to vector<8xf32>
    %18 = vector.shape_cast %17 : vector<8xf32> to vector<8x1xf32>
    %cst_11 = arith.constant 3.125000e-02 : f32
    %19 = vector.broadcast %cst_11 : f32 to vector<8x1xf32>
    %20 = arith.mulf %18, %19 : vector<8x1xf32>
    %21 = arith.mulf %15, %15 : vector<8x128xf32>
    %cst_12 = arith.constant dense<0.000000e+00> : vector<8xf32>
    %22 = vector.multi_reduction <add>, %21, %cst_12 [1] : vector<8x128xf32> to vector<8xf32>
    %23 = vector.shape_cast %22 : vector<8xf32> to vector<8x1xf32>
    %cst_13 = arith.constant 3.125000e-02 : f32
    %24 = vector.broadcast %cst_13 : f32 to vector<8x1xf32>
    %25 = arith.mulf %23, %24 : vector<8x1xf32>
    %26 = arith.mulf %20, %20 : vector<8x1xf32>
    %27 = arith.subf %25, %26 : vector<8x1xf32>
    %cst_14 = arith.constant 0.000000e+00 : f32
    %28 = vector.broadcast %cst_14 : f32 to vector<8x1xf32>
    %29 = arith.maximumf %27, %28 : vector<8x1xf32>
    %30 = vector.broadcast %20 : vector<8x1xf32> to vector<8x128xf32>
    %31 = arith.subf %15, %30 : vector<8x128xf32>
    %cst_15 = arith.constant 9.99999974E-6 : f32
    %32 = vector.broadcast %cst_15 : f32 to vector<8x1xf32>
    %33 = arith.addf %29, %32 : vector<8x1xf32>
    %34 = math.rsqrt %33 : vector<8x1xf32>
    %35 = vector.broadcast %34 : vector<8x1xf32> to vector<8x128xf32>
    %36 = arith.mulf %31, %35 : vector<8x128xf32>
    %37 = vector.broadcast %8 : vector<1x128xf32> to vector<8x128xf32>
    %38 = arith.mulf %36, %37 : vector<8x128xf32>
    %39 = vector.broadcast %9 : vector<1x128xf32> to vector<8x128xf32>
    %40 = arith.addf %38, %39 : vector<8x128xf32>
    %cst_16 = arith.constant 0.000000e+00 : f32
    %41 = vector.broadcast %cst_16 : f32 to vector<8x128xf32>
    %42 = arith.maximumf %40, %41 : vector<8x128xf32>
    %43 = arith.truncf %42 : vector<8x128xf32> to vector<8x128xbf16>
    %cst_17 = arith.constant dense<0.000000e+00> : vector<8x128xf32>
    %44 = tpu.matmul %43, %5, %cst_17 {dimension_numbers = #tpu.dot_dimension_numbers<[1], [0], [0], [1], [0, 0, 1, 1], [], []>} : vector<8x128xbf16>, vector<128x128xbf16>, vector<8x128xf32> -> vector<8x128xf32>
    %45 = vector.broadcast %10 : vector<1x128xf32> to vector<8x128xf32>
    %46 = arith.addf %44, %45 : vector<8x128xf32>
    %cst_18 = arith.constant dense<0.000000e+00> : vector<8xf32>
    %47 = vector.multi_reduction <add>, %46, %cst_18 [1] : vector<8x128xf32> to vector<8xf32>
    %48 = vector.shape_cast %47 : vector<8xf32> to vector<8x1xf32>
    %cst_19 = arith.constant 3.125000e-02 : f32
    %49 = vector.broadcast %cst_19 : f32 to vector<8x1xf32>
    %50 = arith.mulf %48, %49 : vector<8x1xf32>
    %51 = arith.mulf %46, %46 : vector<8x128xf32>
    %cst_20 = arith.constant dense<0.000000e+00> : vector<8xf32>
    %52 = vector.multi_reduction <add>, %51, %cst_20 [1] : vector<8x128xf32> to vector<8xf32>
    %53 = vector.shape_cast %52 : vector<8xf32> to vector<8x1xf32>
    %cst_21 = arith.constant 3.125000e-02 : f32
    %54 = vector.broadcast %cst_21 : f32 to vector<8x1xf32>
    %55 = arith.mulf %53, %54 : vector<8x1xf32>
    %56 = arith.mulf %50, %50 : vector<8x1xf32>
    %57 = arith.subf %55, %56 : vector<8x1xf32>
    %cst_22 = arith.constant 0.000000e+00 : f32
    %58 = vector.broadcast %cst_22 : f32 to vector<8x1xf32>
    %59 = arith.maximumf %57, %58 : vector<8x1xf32>
    %60 = vector.broadcast %50 : vector<8x1xf32> to vector<8x128xf32>
    %61 = arith.subf %46, %60 : vector<8x128xf32>
    %cst_23 = arith.constant 9.99999974E-6 : f32
    %62 = vector.broadcast %cst_23 : f32 to vector<8x1xf32>
    %63 = arith.addf %59, %62 : vector<8x1xf32>
    %64 = math.rsqrt %63 : vector<8x1xf32>
    %65 = vector.broadcast %64 : vector<8x1xf32> to vector<8x128xf32>
    %66 = arith.mulf %61, %65 : vector<8x128xf32>
    %67 = vector.broadcast %11 : vector<1x128xf32> to vector<8x128xf32>
    %68 = arith.mulf %66, %67 : vector<8x128xf32>
    %69 = vector.broadcast %12 : vector<1x128xf32> to vector<8x128xf32>
    %70 = arith.addf %68, %69 : vector<8x128xf32>
    %71 = arith.addf %70, %16 : vector<8x128xf32>
    %cst_24 = arith.constant 0.000000e+00 : f32
    %72 = vector.broadcast %cst_24 : f32 to vector<8x128xf32>
    %73 = arith.maximumf %71, %72 : vector<8x128xf32>
    %cst_25 = arith.constant dense<0.000000e+00> : vector<8x128xf32>
    %74 = tpu.matmul %1, %4, %cst_25 {dimension_numbers = #tpu.dot_dimension_numbers<[1], [0], [0], [1], [0, 0, 1, 1], [], []>} : vector<8x128xbf16>, vector<128x128xbf16>, vector<8x128xf32> -> vector<8x128xf32>
    %75 = vector.broadcast %7 : vector<1x128xf32> to vector<8x128xf32>
    %76 = arith.addf %74, %75 : vector<8x128xf32>
    %77 = arith.extf %1 : vector<8x128xbf16> to vector<8x128xf32>
    %cst_26 = arith.constant dense<0.000000e+00> : vector<8xf32>
    %78 = vector.multi_reduction <add>, %76, %cst_26 [1] : vector<8x128xf32> to vector<8xf32>
    %79 = vector.shape_cast %78 : vector<8xf32> to vector<8x1xf32>
    %cst_27 = arith.constant 3.125000e-02 : f32
    %80 = vector.broadcast %cst_27 : f32 to vector<8x1xf32>
    %81 = arith.mulf %79, %80 : vector<8x1xf32>
    %82 = arith.mulf %76, %76 : vector<8x128xf32>
    %cst_28 = arith.constant dense<0.000000e+00> : vector<8xf32>
    %83 = vector.multi_reduction <add>, %82, %cst_28 [1] : vector<8x128xf32> to vector<8xf32>
    %84 = vector.shape_cast %83 : vector<8xf32> to vector<8x1xf32>
    %cst_29 = arith.constant 3.125000e-02 : f32
    %85 = vector.broadcast %cst_29 : f32 to vector<8x1xf32>
    %86 = arith.mulf %84, %85 : vector<8x1xf32>
    %87 = arith.mulf %81, %81 : vector<8x1xf32>
    %88 = arith.subf %86, %87 : vector<8x1xf32>
    %cst_30 = arith.constant 0.000000e+00 : f32
    %89 = vector.broadcast %cst_30 : f32 to vector<8x1xf32>
    %90 = arith.maximumf %88, %89 : vector<8x1xf32>
    %91 = vector.broadcast %81 : vector<8x1xf32> to vector<8x128xf32>
    %92 = arith.subf %76, %91 : vector<8x128xf32>
    %cst_31 = arith.constant 9.99999974E-6 : f32
    %93 = vector.broadcast %cst_31 : f32 to vector<8x1xf32>
    %94 = arith.addf %90, %93 : vector<8x1xf32>
    %95 = math.rsqrt %94 : vector<8x1xf32>
    %96 = vector.broadcast %95 : vector<8x1xf32> to vector<8x128xf32>
    %97 = arith.mulf %92, %96 : vector<8x128xf32>
    %98 = vector.broadcast %8 : vector<1x128xf32> to vector<8x128xf32>
    %99 = arith.mulf %97, %98 : vector<8x128xf32>
    %100 = vector.broadcast %9 : vector<1x128xf32> to vector<8x128xf32>
    %101 = arith.addf %99, %100 : vector<8x128xf32>
    %cst_32 = arith.constant 0.000000e+00 : f32
    %102 = vector.broadcast %cst_32 : f32 to vector<8x128xf32>
    %103 = arith.maximumf %101, %102 : vector<8x128xf32>
    %104 = arith.truncf %103 : vector<8x128xf32> to vector<8x128xbf16>
    %cst_33 = arith.constant dense<0.000000e+00> : vector<8x128xf32>
    %105 = tpu.matmul %104, %5, %cst_33 {dimension_numbers = #tpu.dot_dimension_numbers<[1], [0], [0], [1], [0, 0, 1, 1], [], []>} : vector<8x128xbf16>, vector<128x128xbf16>, vector<8x128xf32> -> vector<8x128xf32>
    %106 = vector.broadcast %10 : vector<1x128xf32> to vector<8x128xf32>
    %107 = arith.addf %105, %106 : vector<8x128xf32>
    %cst_34 = arith.constant dense<0.000000e+00> : vector<8xf32>
    %108 = vector.multi_reduction <add>, %107, %cst_34 [1] : vector<8x128xf32> to vector<8xf32>
    %109 = vector.shape_cast %108 : vector<8xf32> to vector<8x1xf32>
    %cst_35 = arith.constant 3.125000e-02 : f32
    %110 = vector.broadcast %cst_35 : f32 to vector<8x1xf32>
    %111 = arith.mulf %109, %110 : vector<8x1xf32>
    %112 = arith.mulf %107, %107 : vector<8x128xf32>
    %cst_36 = arith.constant dense<0.000000e+00> : vector<8xf32>
    %113 = vector.multi_reduction <add>, %112, %cst_36 [1] : vector<8x128xf32> to vector<8xf32>
    %114 = vector.shape_cast %113 : vector<8xf32> to vector<8x1xf32>
    %cst_37 = arith.constant 3.125000e-02 : f32
    %115 = vector.broadcast %cst_37 : f32 to vector<8x1xf32>
    %116 = arith.mulf %114, %115 : vector<8x1xf32>
    %117 = arith.mulf %111, %111 : vector<8x1xf32>
    %118 = arith.subf %116, %117 : vector<8x1xf32>
    %cst_38 = arith.constant 0.000000e+00 : f32
    %119 = vector.broadcast %cst_38 : f32 to vector<8x1xf32>
    %120 = arith.maximumf %118, %119 : vector<8x1xf32>
    %121 = vector.broadcast %111 : vector<8x1xf32> to vector<8x128xf32>
    %122 = arith.subf %107, %121 : vector<8x128xf32>
    %cst_39 = arith.constant 9.99999974E-6 : f32
    %123 = vector.broadcast %cst_39 : f32 to vector<8x1xf32>
    %124 = arith.addf %120, %123 : vector<8x1xf32>
    %125 = math.rsqrt %124 : vector<8x1xf32>
    %126 = vector.broadcast %125 : vector<8x1xf32> to vector<8x128xf32>
    %127 = arith.mulf %122, %126 : vector<8x128xf32>
    %128 = vector.broadcast %11 : vector<1x128xf32> to vector<8x128xf32>
    %129 = arith.mulf %127, %128 : vector<8x128xf32>
    %130 = vector.broadcast %12 : vector<1x128xf32> to vector<8x128xf32>
    %131 = arith.addf %129, %130 : vector<8x128xf32>
    %132 = arith.addf %131, %77 : vector<8x128xf32>
    %cst_40 = arith.constant 0.000000e+00 : f32
    %133 = vector.broadcast %cst_40 : f32 to vector<8x128xf32>
    %134 = arith.maximumf %132, %133 : vector<8x128xf32>
    %cst_41 = arith.constant dense<0.000000e+00> : vector<8x128xf32>
    %135 = tpu.matmul %2, %4, %cst_41 {dimension_numbers = #tpu.dot_dimension_numbers<[1], [0], [0], [1], [0, 0, 1, 1], [], []>} : vector<8x128xbf16>, vector<128x128xbf16>, vector<8x128xf32> -> vector<8x128xf32>
    %136 = vector.broadcast %7 : vector<1x128xf32> to vector<8x128xf32>
    %137 = arith.addf %135, %136 : vector<8x128xf32>
    %138 = arith.extf %2 : vector<8x128xbf16> to vector<8x128xf32>
    %cst_42 = arith.constant dense<0.000000e+00> : vector<8xf32>
    %139 = vector.multi_reduction <add>, %137, %cst_42 [1] : vector<8x128xf32> to vector<8xf32>
    %140 = vector.shape_cast %139 : vector<8xf32> to vector<8x1xf32>
    %cst_43 = arith.constant 3.125000e-02 : f32
    %141 = vector.broadcast %cst_43 : f32 to vector<8x1xf32>
    %142 = arith.mulf %140, %141 : vector<8x1xf32>
    %143 = arith.mulf %137, %137 : vector<8x128xf32>
    %cst_44 = arith.constant dense<0.000000e+00> : vector<8xf32>
    %144 = vector.multi_reduction <add>, %143, %cst_44 [1] : vector<8x128xf32> to vector<8xf32>
    %145 = vector.shape_cast %144 : vector<8xf32> to vector<8x1xf32>
    %cst_45 = arith.constant 3.125000e-02 : f32
    %146 = vector.broadcast %cst_45 : f32 to vector<8x1xf32>
    %147 = arith.mulf %145, %146 : vector<8x1xf32>
    %148 = arith.mulf %142, %142 : vector<8x1xf32>
    %149 = arith.subf %147, %148 : vector<8x1xf32>
    %cst_46 = arith.constant 0.000000e+00 : f32
    %150 = vector.broadcast %cst_46 : f32 to vector<8x1xf32>
    %151 = arith.maximumf %149, %150 : vector<8x1xf32>
    %152 = vector.broadcast %142 : vector<8x1xf32> to vector<8x128xf32>
    %153 = arith.subf %137, %152 : vector<8x128xf32>
    %cst_47 = arith.constant 9.99999974E-6 : f32
    %154 = vector.broadcast %cst_47 : f32 to vector<8x1xf32>
    %155 = arith.addf %151, %154 : vector<8x1xf32>
    %156 = math.rsqrt %155 : vector<8x1xf32>
    %157 = vector.broadcast %156 : vector<8x1xf32> to vector<8x128xf32>
    %158 = arith.mulf %153, %157 : vector<8x128xf32>
    %159 = vector.broadcast %8 : vector<1x128xf32> to vector<8x128xf32>
    %160 = arith.mulf %158, %159 : vector<8x128xf32>
    %161 = vector.broadcast %9 : vector<1x128xf32> to vector<8x128xf32>
    %162 = arith.addf %160, %161 : vector<8x128xf32>
    %cst_48 = arith.constant 0.000000e+00 : f32
    %163 = vector.broadcast %cst_48 : f32 to vector<8x128xf32>
    %164 = arith.maximumf %162, %163 : vector<8x128xf32>
    %165 = arith.truncf %164 : vector<8x128xf32> to vector<8x128xbf16>
    %cst_49 = arith.constant dense<0.000000e+00> : vector<8x128xf32>
    %166 = tpu.matmul %165, %5, %cst_49 {dimension_numbers = #tpu.dot_dimension_numbers<[1], [0], [0], [1], [0, 0, 1, 1], [], []>} : vector<8x128xbf16>, vector<128x128xbf16>, vector<8x128xf32> -> vector<8x128xf32>
    %167 = vector.broadcast %10 : vector<1x128xf32> to vector<8x128xf32>
    %168 = arith.addf %166, %167 : vector<8x128xf32>
    %cst_50 = arith.constant dense<0.000000e+00> : vector<8xf32>
    %169 = vector.multi_reduction <add>, %168, %cst_50 [1] : vector<8x128xf32> to vector<8xf32>
    %170 = vector.shape_cast %169 : vector<8xf32> to vector<8x1xf32>
    %cst_51 = arith.constant 3.125000e-02 : f32
    %171 = vector.broadcast %cst_51 : f32 to vector<8x1xf32>
    %172 = arith.mulf %170, %171 : vector<8x1xf32>
    %173 = arith.mulf %168, %168 : vector<8x128xf32>
    %cst_52 = arith.constant dense<0.000000e+00> : vector<8xf32>
    %174 = vector.multi_reduction <add>, %173, %cst_52 [1] : vector<8x128xf32> to vector<8xf32>
    %175 = vector.shape_cast %174 : vector<8xf32> to vector<8x1xf32>
    %cst_53 = arith.constant 3.125000e-02 : f32
    %176 = vector.broadcast %cst_53 : f32 to vector<8x1xf32>
    %177 = arith.mulf %175, %176 : vector<8x1xf32>
    %178 = arith.mulf %172, %172 : vector<8x1xf32>
    %179 = arith.subf %177, %178 : vector<8x1xf32>
    %cst_54 = arith.constant 0.000000e+00 : f32
    %180 = vector.broadcast %cst_54 : f32 to vector<8x1xf32>
    %181 = arith.maximumf %179, %180 : vector<8x1xf32>
    %182 = vector.broadcast %172 : vector<8x1xf32> to vector<8x128xf32>
    %183 = arith.subf %168, %182 : vector<8x128xf32>
    %cst_55 = arith.constant 9.99999974E-6 : f32
    %184 = vector.broadcast %cst_55 : f32 to vector<8x1xf32>
    %185 = arith.addf %181, %184 : vector<8x1xf32>
    %186 = math.rsqrt %185 : vector<8x1xf32>
    %187 = vector.broadcast %186 : vector<8x1xf32> to vector<8x128xf32>
    %188 = arith.mulf %183, %187 : vector<8x128xf32>
    %189 = vector.broadcast %11 : vector<1x128xf32> to vector<8x128xf32>
    %190 = arith.mulf %188, %189 : vector<8x128xf32>
    %191 = vector.broadcast %12 : vector<1x128xf32> to vector<8x128xf32>
    %192 = arith.addf %190, %191 : vector<8x128xf32>
    %193 = arith.addf %192, %138 : vector<8x128xf32>
    %cst_56 = arith.constant 0.000000e+00 : f32
    %194 = vector.broadcast %cst_56 : f32 to vector<8x128xf32>
    %195 = arith.maximumf %193, %194 : vector<8x128xf32>
    %cst_57 = arith.constant dense<0.000000e+00> : vector<8x128xf32>
    %196 = tpu.matmul %3, %4, %cst_57 {dimension_numbers = #tpu.dot_dimension_numbers<[1], [0], [0], [1], [0, 0, 1, 1], [], []>} : vector<8x128xbf16>, vector<128x128xbf16>, vector<8x128xf32> -> vector<8x128xf32>
    %197 = vector.broadcast %7 : vector<1x128xf32> to vector<8x128xf32>
    %198 = arith.addf %196, %197 : vector<8x128xf32>
    %199 = arith.extf %3 : vector<8x128xbf16> to vector<8x128xf32>
    %cst_58 = arith.constant dense<0.000000e+00> : vector<8xf32>
    %200 = vector.multi_reduction <add>, %198, %cst_58 [1] : vector<8x128xf32> to vector<8xf32>
    %201 = vector.shape_cast %200 : vector<8xf32> to vector<8x1xf32>
    %cst_59 = arith.constant 3.125000e-02 : f32
    %202 = vector.broadcast %cst_59 : f32 to vector<8x1xf32>
    %203 = arith.mulf %201, %202 : vector<8x1xf32>
    %204 = arith.mulf %198, %198 : vector<8x128xf32>
    %cst_60 = arith.constant dense<0.000000e+00> : vector<8xf32>
    %205 = vector.multi_reduction <add>, %204, %cst_60 [1] : vector<8x128xf32> to vector<8xf32>
    %206 = vector.shape_cast %205 : vector<8xf32> to vector<8x1xf32>
    %cst_61 = arith.constant 3.125000e-02 : f32
    %207 = vector.broadcast %cst_61 : f32 to vector<8x1xf32>
    %208 = arith.mulf %206, %207 : vector<8x1xf32>
    %209 = arith.mulf %203, %203 : vector<8x1xf32>
    %210 = arith.subf %208, %209 : vector<8x1xf32>
    %cst_62 = arith.constant 0.000000e+00 : f32
    %211 = vector.broadcast %cst_62 : f32 to vector<8x1xf32>
    %212 = arith.maximumf %210, %211 : vector<8x1xf32>
    %213 = vector.broadcast %203 : vector<8x1xf32> to vector<8x128xf32>
    %214 = arith.subf %198, %213 : vector<8x128xf32>
    %cst_63 = arith.constant 9.99999974E-6 : f32
    %215 = vector.broadcast %cst_63 : f32 to vector<8x1xf32>
    %216 = arith.addf %212, %215 : vector<8x1xf32>
    %217 = math.rsqrt %216 : vector<8x1xf32>
    %218 = vector.broadcast %217 : vector<8x1xf32> to vector<8x128xf32>
    %219 = arith.mulf %214, %218 : vector<8x128xf32>
    %220 = vector.broadcast %8 : vector<1x128xf32> to vector<8x128xf32>
    %221 = arith.mulf %219, %220 : vector<8x128xf32>
    %222 = vector.broadcast %9 : vector<1x128xf32> to vector<8x128xf32>
    %223 = arith.addf %221, %222 : vector<8x128xf32>
    %cst_64 = arith.constant 0.000000e+00 : f32
    %224 = vector.broadcast %cst_64 : f32 to vector<8x128xf32>
    %225 = arith.maximumf %223, %224 : vector<8x128xf32>
    %226 = arith.truncf %225 : vector<8x128xf32> to vector<8x128xbf16>
    %cst_65 = arith.constant dense<0.000000e+00> : vector<8x128xf32>
    %227 = tpu.matmul %226, %5, %cst_65 {dimension_numbers = #tpu.dot_dimension_numbers<[1], [0], [0], [1], [0, 0, 1, 1], [], []>} : vector<8x128xbf16>, vector<128x128xbf16>, vector<8x128xf32> -> vector<8x128xf32>
    %228 = vector.broadcast %10 : vector<1x128xf32> to vector<8x128xf32>
    %229 = arith.addf %227, %228 : vector<8x128xf32>
    %cst_66 = arith.constant dense<0.000000e+00> : vector<8xf32>
    %230 = vector.multi_reduction <add>, %229, %cst_66 [1] : vector<8x128xf32> to vector<8xf32>
    %231 = vector.shape_cast %230 : vector<8xf32> to vector<8x1xf32>
    %cst_67 = arith.constant 3.125000e-02 : f32
    %232 = vector.broadcast %cst_67 : f32 to vector<8x1xf32>
    %233 = arith.mulf %231, %232 : vector<8x1xf32>
    %234 = arith.mulf %229, %229 : vector<8x128xf32>
    %cst_68 = arith.constant dense<0.000000e+00> : vector<8xf32>
    %235 = vector.multi_reduction <add>, %234, %cst_68 [1] : vector<8x128xf32> to vector<8xf32>
    %236 = vector.shape_cast %235 : vector<8xf32> to vector<8x1xf32>
    %cst_69 = arith.constant 3.125000e-02 : f32
    %237 = vector.broadcast %cst_69 : f32 to vector<8x1xf32>
    %238 = arith.mulf %236, %237 : vector<8x1xf32>
    %239 = arith.mulf %233, %233 : vector<8x1xf32>
    %240 = arith.subf %238, %239 : vector<8x1xf32>
    %cst_70 = arith.constant 0.000000e+00 : f32
    %241 = vector.broadcast %cst_70 : f32 to vector<8x1xf32>
    %242 = arith.maximumf %240, %241 : vector<8x1xf32>
    %243 = vector.broadcast %233 : vector<8x1xf32> to vector<8x128xf32>
    %244 = arith.subf %229, %243 : vector<8x128xf32>
    %cst_71 = arith.constant 9.99999974E-6 : f32
    %245 = vector.broadcast %cst_71 : f32 to vector<8x1xf32>
    %246 = arith.addf %242, %245 : vector<8x1xf32>
    %247 = math.rsqrt %246 : vector<8x1xf32>
    %248 = vector.broadcast %247 : vector<8x1xf32> to vector<8x128xf32>
    %249 = arith.mulf %244, %248 : vector<8x128xf32>
    %250 = vector.broadcast %11 : vector<1x128xf32> to vector<8x128xf32>
    %251 = arith.mulf %249, %250 : vector<8x128xf32>
    %252 = vector.broadcast %12 : vector<1x128xf32> to vector<8x128xf32>
    %253 = arith.addf %251, %252 : vector<8x128xf32>
    %254 = arith.addf %253, %199 : vector<8x128xf32>
    %cst_72 = arith.constant 0.000000e+00 : f32
    %255 = vector.broadcast %cst_72 : f32 to vector<8x128xf32>
    %256 = arith.maximumf %254, %255 : vector<8x128xf32>
    %257 = arith.maximumf %73, %134 : vector<8x128xf32>
    %258 = arith.maximumf %195, %256 : vector<8x128xf32>
    %c0_73 = arith.constant 0 : index
    %c0_74 = arith.constant 0 : index
    %259 = vector.load %arg13[%c0_73, %c0_74] : memref<8x256xf32, #tpu.memory_space<vmem>>, vector<8x128xf32>
    tpu.vector_store %arg13[%c0_73, %c0_74], %257 {strides = array<i32>} : memref<8x256xf32, #tpu.memory_space<vmem>>, vector<8x128xf32>,
    %c0_75 = arith.constant 0 : index
    %c128_76 = arith.constant 128 : index
    %260 = vector.load %arg13[%c0_75, %c128_76] : memref<8x256xf32, #tpu.memory_space<vmem>>, vector<8x128xf32>
    tpu.vector_store %arg13[%c0_75, %c128_76], %258 {strides = array<i32>} : memref<8x256xf32, #tpu.memory_space<vmem>>, vector<8x128xf32>,
    %c0_77 = arith.constant 0 : index
    %c0_78 = arith.constant 0 : index
    %261 = vector.load %arg5[%c0_77, %c0_78] : memref<128x256xbf16, #tpu.memory_space<vmem>>, vector<128x256xbf16>
    %c0_79 = arith.constant 0 : index
    %c0_80 = arith.constant 0 : index
    %262 = vector.load %arg6[%c0_79, %c0_80] : memref<128x128xbf16, #tpu.memory_space<vmem>>, vector<128x128xbf16>
    %c0_81 = arith.constant 0 : index
    %c0_82 = arith.constant 0 : index
    %263 = vector.load %arg7[%c0_81, %c0_82] : memref<8x128xf32, #tpu.memory_space<vmem>>, vector<8x128xf32>
    %264 = vector.extract_strided_slice %263 {offsets = [0, 0], sizes = [1, 128], strides = [1, 1]} : vector<8x128xf32> to vector<1x128xf32>
    %265 = vector.extract_strided_slice %263 {offsets = [1, 0], sizes = [1, 128], strides = [1, 1]} : vector<8x128xf32> to vector<1x128xf32>
    %266 = vector.extract_strided_slice %263 {offsets = [2, 0], sizes = [1, 128], strides = [1, 1]} : vector<8x128xf32> to vector<1x128xf32>
    %267 = vector.extract_strided_slice %263 {offsets = [3, 0], sizes = [1, 128], strides = [1, 1]} : vector<8x128xf32> to vector<1x128xf32>
    %268 = vector.extract_strided_slice %263 {offsets = [4, 0], sizes = [1, 128], strides = [1, 1]} : vector<8x128xf32> to vector<1x128xf32>
    %269 = vector.extract_strided_slice %263 {offsets = [5, 0], sizes = [1, 128], strides = [1, 1]} : vector<8x128xf32> to vector<1x128xf32>
    %270 = vector.extract_strided_slice %263 {offsets = [6, 0], sizes = [1, 128], strides = [1, 1]} : vector<8x128xf32> to vector<1x128xf32>
    %271 = arith.truncf %257 : vector<8x128xf32> to vector<8x128xbf16>
    %cst_83 = arith.constant dense<0.000000e+00> : vector<8x256xf32>
    %272 = tpu.matmul %271, %261, %cst_83 {dimension_numbers = #tpu.dot_dimension_numbers<[1], [0], [0], [1], [0, 0, 1, 1], [], []>} : vector<8x128xbf16>, vector<128x256xbf16>, vector<8x256xf32> -> vector<8x256xf32>
    %273 = vector.extract_strided_slice %272 {offsets = [0, 0], sizes = [8, 128], strides = [1, 1]} : vector<8x256xf32> to vector<8x128xf32>
    %274 = vector.broadcast %264 : vector<1x128xf32> to vector<8x128xf32>
    %275 = arith.addf %273, %274 : vector<8x128xf32>
    %276 = vector.extract_strided_slice %272 {offsets = [0, 128], sizes = [8, 128], strides = [1, 1]} : vector<8x256xf32> to vector<8x128xf32>
    %277 = vector.broadcast %270 : vector<1x128xf32> to vector<8x128xf32>
    %278 = arith.addf %276, %277 : vector<8x128xf32>
    %cst_84 = arith.constant dense<0.000000e+00> : vector<8xf32>
    %279 = vector.multi_reduction <add>, %275, %cst_84 [1] : vector<8x128xf32> to vector<8xf32>
    %280 = vector.shape_cast %279 : vector<8xf32> to vector<8x1xf32>
    %cst_85 = arith.constant 1.562500e-02 : f32
    %281 = vector.broadcast %cst_85 : f32 to vector<8x1xf32>
    %282 = arith.mulf %280, %281 : vector<8x1xf32>
    %283 = arith.mulf %275, %275 : vector<8x128xf32>
    %cst_86 = arith.constant dense<0.000000e+00> : vector<8xf32>
    %284 = vector.multi_reduction <add>, %283, %cst_86 [1] : vector<8x128xf32> to vector<8xf32>
    %285 = vector.shape_cast %284 : vector<8xf32> to vector<8x1xf32>
    %cst_87 = arith.constant 1.562500e-02 : f32
    %286 = vector.broadcast %cst_87 : f32 to vector<8x1xf32>
    %287 = arith.mulf %285, %286 : vector<8x1xf32>
    %288 = arith.mulf %282, %282 : vector<8x1xf32>
    %289 = arith.subf %287, %288 : vector<8x1xf32>
    %cst_88 = arith.constant 0.000000e+00 : f32
    %290 = vector.broadcast %cst_88 : f32 to vector<8x1xf32>
    %291 = arith.maximumf %289, %290 : vector<8x1xf32>
    %292 = vector.broadcast %282 : vector<8x1xf32> to vector<8x128xf32>
    %293 = arith.subf %275, %292 : vector<8x128xf32>
    %cst_89 = arith.constant 9.99999974E-6 : f32
    %294 = vector.broadcast %cst_89 : f32 to vector<8x1xf32>
    %295 = arith.addf %291, %294 : vector<8x1xf32>
    %296 = math.rsqrt %295 : vector<8x1xf32>
    %297 = vector.broadcast %296 : vector<8x1xf32> to vector<8x128xf32>
    %298 = arith.mulf %293, %297 : vector<8x128xf32>
    %299 = vector.broadcast %265 : vector<1x128xf32> to vector<8x128xf32>
    %300 = arith.mulf %298, %299 : vector<8x128xf32>
    %301 = vector.broadcast %266 : vector<1x128xf32> to vector<8x128xf32>
    %302 = arith.addf %300, %301 : vector<8x128xf32>
    %cst_90 = arith.constant 0.000000e+00 : f32
    %303 = vector.broadcast %cst_90 : f32 to vector<8x128xf32>
    %304 = arith.maximumf %302, %303 : vector<8x128xf32>
    %305 = arith.truncf %304 : vector<8x128xf32> to vector<8x128xbf16>
    %cst_91 = arith.constant dense<0.000000e+00> : vector<8x128xf32>
    %306 = tpu.matmul %305, %262, %cst_91 {dimension_numbers = #tpu.dot_dimension_numbers<[1], [0], [0], [1], [0, 0, 1, 1], [], []>} : vector<8x128xbf16>, vector<128x128xbf16>, vector<8x128xf32> -> vector<8x128xf32>
    %307 = vector.broadcast %267 : vector<1x128xf32> to vector<8x128xf32>
    %308 = arith.addf %306, %307 : vector<8x128xf32>
    %cst_92 = arith.constant dense<0.000000e+00> : vector<8xf32>
    %309 = vector.multi_reduction <add>, %308, %cst_92 [1] : vector<8x128xf32> to vector<8xf32>
    %310 = vector.shape_cast %309 : vector<8xf32> to vector<8x1xf32>
    %cst_93 = arith.constant 1.562500e-02 : f32
    %311 = vector.broadcast %cst_93 : f32 to vector<8x1xf32>
    %312 = arith.mulf %310, %311 : vector<8x1xf32>
    %313 = arith.mulf %308, %308 : vector<8x128xf32>
    %cst_94 = arith.constant dense<0.000000e+00> : vector<8xf32>
    %314 = vector.multi_reduction <add>, %313, %cst_94 [1] : vector<8x128xf32> to vector<8xf32>
    %315 = vector.shape_cast %314 : vector<8xf32> to vector<8x1xf32>
    %cst_95 = arith.constant 1.562500e-02 : f32
    %316 = vector.broadcast %cst_95 : f32 to vector<8x1xf32>
    %317 = arith.mulf %315, %316 : vector<8x1xf32>
    %318 = arith.mulf %312, %312 : vector<8x1xf32>
    %319 = arith.subf %317, %318 : vector<8x1xf32>
    %cst_96 = arith.constant 0.000000e+00 : f32
    %320 = vector.broadcast %cst_96 : f32 to vector<8x1xf32>
    %321 = arith.maximumf %319, %320 : vector<8x1xf32>
    %322 = vector.broadcast %312 : vector<8x1xf32> to vector<8x128xf32>
    %323 = arith.subf %308, %322 : vector<8x128xf32>
    %cst_97 = arith.constant 9.99999974E-6 : f32
    %324 = vector.broadcast %cst_97 : f32 to vector<8x1xf32>
    %325 = arith.addf %321, %324 : vector<8x1xf32>
    %326 = math.rsqrt %325 : vector<8x1xf32>
    %327 = vector.broadcast %326 : vector<8x1xf32> to vector<8x128xf32>
    %328 = arith.mulf %323, %327 : vector<8x128xf32>
    %329 = vector.broadcast %268 : vector<1x128xf32> to vector<8x128xf32>
    %330 = arith.mulf %328, %329 : vector<8x128xf32>
    %331 = vector.broadcast %269 : vector<1x128xf32> to vector<8x128xf32>
    %332 = arith.addf %330, %331 : vector<8x128xf32>
    %333 = arith.addf %332, %278 : vector<8x128xf32>
    %cst_98 = arith.constant 0.000000e+00 : f32
    %334 = vector.broadcast %cst_98 : f32 to vector<8x128xf32>
    %335 = arith.maximumf %333, %334 : vector<8x128xf32>
    %336 = arith.truncf %258 : vector<8x128xf32> to vector<8x128xbf16>
    %cst_99 = arith.constant dense<0.000000e+00> : vector<8x256xf32>
    %337 = tpu.matmul %336, %261, %cst_99 {dimension_numbers = #tpu.dot_dimension_numbers<[1], [0], [0], [1], [0, 0, 1, 1], [], []>} : vector<8x128xbf16>, vector<128x256xbf16>, vector<8x256xf32> -> vector<8x256xf32>
    %338 = vector.extract_strided_slice %337 {offsets = [0, 0], sizes = [8, 128], strides = [1, 1]} : vector<8x256xf32> to vector<8x128xf32>
    %339 = vector.broadcast %264 : vector<1x128xf32> to vector<8x128xf32>
    %340 = arith.addf %338, %339 : vector<8x128xf32>
    %341 = vector.extract_strided_slice %337 {offsets = [0, 128], sizes = [8, 128], strides = [1, 1]} : vector<8x256xf32> to vector<8x128xf32>
    %342 = vector.broadcast %270 : vector<1x128xf32> to vector<8x128xf32>
    %343 = arith.addf %341, %342 : vector<8x128xf32>
    %cst_100 = arith.constant dense<0.000000e+00> : vector<8xf32>
    %344 = vector.multi_reduction <add>, %340, %cst_100 [1] : vector<8x128xf32> to vector<8xf32>
    %345 = vector.shape_cast %344 : vector<8xf32> to vector<8x1xf32>
    %cst_101 = arith.constant 1.562500e-02 : f32
    %346 = vector.broadcast %cst_101 : f32 to vector<8x1xf32>
    %347 = arith.mulf %345, %346 : vector<8x1xf32>
    %348 = arith.mulf %340, %340 : vector<8x128xf32>
    %cst_102 = arith.constant dense<0.000000e+00> : vector<8xf32>
    %349 = vector.multi_reduction <add>, %348, %cst_102 [1] : vector<8x128xf32> to vector<8xf32>
    %350 = vector.shape_cast %349 : vector<8xf32> to vector<8x1xf32>
    %cst_103 = arith.constant 1.562500e-02 : f32
    %351 = vector.broadcast %cst_103 : f32 to vector<8x1xf32>
    %352 = arith.mulf %350, %351 : vector<8x1xf32>
    %353 = arith.mulf %347, %347 : vector<8x1xf32>
    %354 = arith.subf %352, %353 : vector<8x1xf32>
    %cst_104 = arith.constant 0.000000e+00 : f32
    %355 = vector.broadcast %cst_104 : f32 to vector<8x1xf32>
    %356 = arith.maximumf %354, %355 : vector<8x1xf32>
    %357 = vector.broadcast %347 : vector<8x1xf32> to vector<8x128xf32>
    %358 = arith.subf %340, %357 : vector<8x128xf32>
    %cst_105 = arith.constant 9.99999974E-6 : f32
    %359 = vector.broadcast %cst_105 : f32 to vector<8x1xf32>
    %360 = arith.addf %356, %359 : vector<8x1xf32>
    %361 = math.rsqrt %360 : vector<8x1xf32>
    %362 = vector.broadcast %361 : vector<8x1xf32> to vector<8x128xf32>
    %363 = arith.mulf %358, %362 : vector<8x128xf32>
    %364 = vector.broadcast %265 : vector<1x128xf32> to vector<8x128xf32>
    %365 = arith.mulf %363, %364 : vector<8x128xf32>
    %366 = vector.broadcast %266 : vector<1x128xf32> to vector<8x128xf32>
    %367 = arith.addf %365, %366 : vector<8x128xf32>
    %cst_106 = arith.constant 0.000000e+00 : f32
    %368 = vector.broadcast %cst_106 : f32 to vector<8x128xf32>
    %369 = arith.maximumf %367, %368 : vector<8x128xf32>
    %370 = arith.truncf %369 : vector<8x128xf32> to vector<8x128xbf16>
    %cst_107 = arith.constant dense<0.000000e+00> : vector<8x128xf32>
    %371 = tpu.matmul %370, %262, %cst_107 {dimension_numbers = #tpu.dot_dimension_numbers<[1], [0], [0], [1], [0, 0, 1, 1], [], []>} : vector<8x128xbf16>, vector<128x128xbf16>, vector<8x128xf32> -> vector<8x128xf32>
    %372 = vector.broadcast %267 : vector<1x128xf32> to vector<8x128xf32>
    %373 = arith.addf %371, %372 : vector<8x128xf32>
    %cst_108 = arith.constant dense<0.000000e+00> : vector<8xf32>
    %374 = vector.multi_reduction <add>, %373, %cst_108 [1] : vector<8x128xf32> to vector<8xf32>
    %375 = vector.shape_cast %374 : vector<8xf32> to vector<8x1xf32>
    %cst_109 = arith.constant 1.562500e-02 : f32
    %376 = vector.broadcast %cst_109 : f32 to vector<8x1xf32>
    %377 = arith.mulf %375, %376 : vector<8x1xf32>
    %378 = arith.mulf %373, %373 : vector<8x128xf32>
    %cst_110 = arith.constant dense<0.000000e+00> : vector<8xf32>
    %379 = vector.multi_reduction <add>, %378, %cst_110 [1] : vector<8x128xf32> to vector<8xf32>
    %380 = vector.shape_cast %379 : vector<8xf32> to vector<8x1xf32>
    %cst_111 = arith.constant 1.562500e-02 : f32
    %381 = vector.broadcast %cst_111 : f32 to vector<8x1xf32>
    %382 = arith.mulf %380, %381 : vector<8x1xf32>
    %383 = arith.mulf %377, %377 : vector<8x1xf32>
    %384 = arith.subf %382, %383 : vector<8x1xf32>
    %cst_112 = arith.constant 0.000000e+00 : f32
    %385 = vector.broadcast %cst_112 : f32 to vector<8x1xf32>
    %386 = arith.maximumf %384, %385 : vector<8x1xf32>
    %387 = vector.broadcast %377 : vector<8x1xf32> to vector<8x128xf32>
    %388 = arith.subf %373, %387 : vector<8x128xf32>
    %cst_113 = arith.constant 9.99999974E-6 : f32
    %389 = vector.broadcast %cst_113 : f32 to vector<8x1xf32>
    %390 = arith.addf %386, %389 : vector<8x1xf32>
    %391 = math.rsqrt %390 : vector<8x1xf32>
    %392 = vector.broadcast %391 : vector<8x1xf32> to vector<8x128xf32>
    %393 = arith.mulf %388, %392 : vector<8x128xf32>
    %394 = vector.broadcast %268 : vector<1x128xf32> to vector<8x128xf32>
    %395 = arith.mulf %393, %394 : vector<8x128xf32>
    %396 = vector.broadcast %269 : vector<1x128xf32> to vector<8x128xf32>
    %397 = arith.addf %395, %396 : vector<8x128xf32>
    %398 = arith.addf %397, %343 : vector<8x128xf32>
    %cst_114 = arith.constant 0.000000e+00 : f32
    %399 = vector.broadcast %cst_114 : f32 to vector<8x128xf32>
    %400 = arith.maximumf %398, %399 : vector<8x128xf32>
    %c0_115 = arith.constant 0 : index
    %c0_116 = arith.constant 0 : index
    %401 = vector.load %arg14[%c0_115, %c0_116] : memref<8x256xf32, #tpu.memory_space<vmem>>, vector<8x128xf32>
    tpu.vector_store %arg14[%c0_115, %c0_116], %335 {strides = array<i32>} : memref<8x256xf32, #tpu.memory_space<vmem>>, vector<8x128xf32>,
    %c0_117 = arith.constant 0 : index
    %c128_118 = arith.constant 128 : index
    %402 = vector.load %arg14[%c0_117, %c128_118] : memref<8x256xf32, #tpu.memory_space<vmem>>, vector<8x128xf32>
    tpu.vector_store %arg14[%c0_117, %c128_118], %400 {strides = array<i32>} : memref<8x256xf32, #tpu.memory_space<vmem>>, vector<8x128xf32>,
    %c0_119 = arith.constant 0 : index
    %c0_120 = arith.constant 0 : index
    %403 = vector.load %arg8[%c0_119, %c0_120] : memref<128x256xbf16, #tpu.memory_space<vmem>>, vector<128x256xbf16>
    %c0_121 = arith.constant 0 : index
    %c0_122 = arith.constant 0 : index
    %404 = vector.load %arg9[%c0_121, %c0_122] : memref<128x128xbf16, #tpu.memory_space<vmem>>, vector<128x128xbf16>
    %c0_123 = arith.constant 0 : index
    %c0_124 = arith.constant 0 : index
    %405 = vector.load %arg10[%c0_123, %c0_124] : memref<8x128xf32, #tpu.memory_space<vmem>>, vector<8x128xf32>
    %406 = vector.extract_strided_slice %405 {offsets = [0, 0], sizes = [1, 128], strides = [1, 1]} : vector<8x128xf32> to vector<1x128xf32>
    %407 = vector.extract_strided_slice %405 {offsets = [1, 0], sizes = [1, 128], strides = [1, 1]} : vector<8x128xf32> to vector<1x128xf32>
    %408 = vector.extract_strided_slice %405 {offsets = [2, 0], sizes = [1, 128], strides = [1, 1]} : vector<8x128xf32> to vector<1x128xf32>
    %409 = vector.extract_strided_slice %405 {offsets = [3, 0], sizes = [1, 128], strides = [1, 1]} : vector<8x128xf32> to vector<1x128xf32>
    %410 = vector.extract_strided_slice %405 {offsets = [4, 0], sizes = [1, 128], strides = [1, 1]} : vector<8x128xf32> to vector<1x128xf32>
    %411 = vector.extract_strided_slice %405 {offsets = [5, 0], sizes = [1, 128], strides = [1, 1]} : vector<8x128xf32> to vector<1x128xf32>
    %412 = vector.extract_strided_slice %405 {offsets = [6, 0], sizes = [1, 128], strides = [1, 1]} : vector<8x128xf32> to vector<1x128xf32>
    %413 = arith.truncf %335 : vector<8x128xf32> to vector<8x128xbf16>
    %cst_125 = arith.constant dense<0.000000e+00> : vector<8x256xf32>
    %414 = tpu.matmul %413, %403, %cst_125 {dimension_numbers = #tpu.dot_dimension_numbers<[1], [0], [0], [1], [0, 0, 1, 1], [], []>} : vector<8x128xbf16>, vector<128x256xbf16>, vector<8x256xf32> -> vector<8x256xf32>
    %415 = vector.extract_strided_slice %414 {offsets = [0, 0], sizes = [8, 128], strides = [1, 1]} : vector<8x256xf32> to vector<8x128xf32>
    %416 = vector.broadcast %406 : vector<1x128xf32> to vector<8x128xf32>
    %417 = arith.addf %415, %416 : vector<8x128xf32>
    %418 = vector.extract_strided_slice %414 {offsets = [0, 128], sizes = [8, 128], strides = [1, 1]} : vector<8x256xf32> to vector<8x128xf32>
    %419 = vector.broadcast %412 : vector<1x128xf32> to vector<8x128xf32>
    %420 = arith.addf %418, %419 : vector<8x128xf32>
    %cst_126 = arith.constant dense<0.000000e+00> : vector<8xf32>
    %421 = vector.multi_reduction <add>, %417, %cst_126 [1] : vector<8x128xf32> to vector<8xf32>
    %422 = vector.shape_cast %421 : vector<8xf32> to vector<8x1xf32>
    %cst_127 = arith.constant 3.125000e-02 : f32
    %423 = vector.broadcast %cst_127 : f32 to vector<8x1xf32>
    %424 = arith.mulf %422, %423 : vector<8x1xf32>
    %425 = arith.mulf %417, %417 : vector<8x128xf32>
    %cst_128 = arith.constant dense<0.000000e+00> : vector<8xf32>
    %426 = vector.multi_reduction <add>, %425, %cst_128 [1] : vector<8x128xf32> to vector<8xf32>
    %427 = vector.shape_cast %426 : vector<8xf32> to vector<8x1xf32>
    %cst_129 = arith.constant 3.125000e-02 : f32
    %428 = vector.broadcast %cst_129 : f32 to vector<8x1xf32>
    %429 = arith.mulf %427, %428 : vector<8x1xf32>
    %430 = arith.mulf %424, %424 : vector<8x1xf32>
    %431 = arith.subf %429, %430 : vector<8x1xf32>
    %cst_130 = arith.constant 0.000000e+00 : f32
    %432 = vector.broadcast %cst_130 : f32 to vector<8x1xf32>
    %433 = arith.maximumf %431, %432 : vector<8x1xf32>
    %434 = vector.broadcast %424 : vector<8x1xf32> to vector<8x128xf32>
    %435 = arith.subf %417, %434 : vector<8x128xf32>
    %cst_131 = arith.constant 9.99999974E-6 : f32
    %436 = vector.broadcast %cst_131 : f32 to vector<8x1xf32>
    %437 = arith.addf %433, %436 : vector<8x1xf32>
    %438 = math.rsqrt %437 : vector<8x1xf32>
    %439 = vector.broadcast %438 : vector<8x1xf32> to vector<8x128xf32>
    %440 = arith.mulf %435, %439 : vector<8x128xf32>
    %441 = vector.broadcast %407 : vector<1x128xf32> to vector<8x128xf32>
    %442 = arith.mulf %440, %441 : vector<8x128xf32>
    %443 = vector.broadcast %408 : vector<1x128xf32> to vector<8x128xf32>
    %444 = arith.addf %442, %443 : vector<8x128xf32>
    %cst_132 = arith.constant 0.000000e+00 : f32
    %445 = vector.broadcast %cst_132 : f32 to vector<8x128xf32>
    %446 = arith.maximumf %444, %445 : vector<8x128xf32>
    %447 = arith.truncf %446 : vector<8x128xf32> to vector<8x128xbf16>
    %cst_133 = arith.constant dense<0.000000e+00> : vector<8x128xf32>
    %448 = tpu.matmul %447, %404, %cst_133 {dimension_numbers = #tpu.dot_dimension_numbers<[1], [0], [0], [1], [0, 0, 1, 1], [], []>} : vector<8x128xbf16>, vector<128x128xbf16>, vector<8x128xf32> -> vector<8x128xf32>
    %449 = vector.broadcast %409 : vector<1x128xf32> to vector<8x128xf32>
    %450 = arith.addf %448, %449 : vector<8x128xf32>
    %cst_134 = arith.constant dense<0.000000e+00> : vector<8xf32>
    %451 = vector.multi_reduction <add>, %450, %cst_134 [1] : vector<8x128xf32> to vector<8xf32>
    %452 = vector.shape_cast %451 : vector<8xf32> to vector<8x1xf32>
    %cst_135 = arith.constant 3.125000e-02 : f32
    %453 = vector.broadcast %cst_135 : f32 to vector<8x1xf32>
    %454 = arith.mulf %452, %453 : vector<8x1xf32>
    %455 = arith.mulf %450, %450 : vector<8x128xf32>
    %cst_136 = arith.constant dense<0.000000e+00> : vector<8xf32>
    %456 = vector.multi_reduction <add>, %455, %cst_136 [1] : vector<8x128xf32> to vector<8xf32>
    %457 = vector.shape_cast %456 : vector<8xf32> to vector<8x1xf32>
    %cst_137 = arith.constant 3.125000e-02 : f32
    %458 = vector.broadcast %cst_137 : f32 to vector<8x1xf32>
    %459 = arith.mulf %457, %458 : vector<8x1xf32>
    %460 = arith.mulf %454, %454 : vector<8x1xf32>
    %461 = arith.subf %459, %460 : vector<8x1xf32>
    %cst_138 = arith.constant 0.000000e+00 : f32
    %462 = vector.broadcast %cst_138 : f32 to vector<8x1xf32>
    %463 = arith.maximumf %461, %462 : vector<8x1xf32>
    %464 = vector.broadcast %454 : vector<8x1xf32> to vector<8x128xf32>
    %465 = arith.subf %450, %464 : vector<8x128xf32>
    %cst_139 = arith.constant 9.99999974E-6 : f32
    %466 = vector.broadcast %cst_139 : f32 to vector<8x1xf32>
    %467 = arith.addf %463, %466 : vector<8x1xf32>
    %468 = math.rsqrt %467 : vector<8x1xf32>
    %469 = vector.broadcast %468 : vector<8x1xf32> to vector<8x128xf32>
    %470 = arith.mulf %465, %469 : vector<8x128xf32>
    %471 = vector.broadcast %410 : vector<1x128xf32> to vector<8x128xf32>
    %472 = arith.mulf %470, %471 : vector<8x128xf32>
    %473 = vector.broadcast %411 : vector<1x128xf32> to vector<8x128xf32>
    %474 = arith.addf %472, %473 : vector<8x128xf32>
    %475 = arith.addf %474, %420 : vector<8x128xf32>
    %cst_140 = arith.constant 0.000000e+00 : f32
    %476 = vector.broadcast %cst_140 : f32 to vector<8x128xf32>
    %477 = arith.maximumf %475, %476 : vector<8x128xf32>
    %478 = arith.truncf %400 : vector<8x128xf32> to vector<8x128xbf16>
    %cst_141 = arith.constant dense<0.000000e+00> : vector<8x256xf32>
    %479 = tpu.matmul %478, %403, %cst_141 {dimension_numbers = #tpu.dot_dimension_numbers<[1], [0], [0], [1], [0, 0, 1, 1], [], []>} : vector<8x128xbf16>, vector<128x256xbf16>, vector<8x256xf32> -> vector<8x256xf32>
    %480 = vector.extract_strided_slice %479 {offsets = [0, 0], sizes = [8, 128], strides = [1, 1]} : vector<8x256xf32> to vector<8x128xf32>
    %481 = vector.broadcast %406 : vector<1x128xf32> to vector<8x128xf32>
    %482 = arith.addf %480, %481 : vector<8x128xf32>
    %483 = vector.extract_strided_slice %479 {offsets = [0, 128], sizes = [8, 128], strides = [1, 1]} : vector<8x256xf32> to vector<8x128xf32>
    %484 = vector.broadcast %412 : vector<1x128xf32> to vector<8x128xf32>
    %485 = arith.addf %483, %484 : vector<8x128xf32>
    %cst_142 = arith.constant dense<0.000000e+00> : vector<8xf32>
    %486 = vector.multi_reduction <add>, %482, %cst_142 [1] : vector<8x128xf32> to vector<8xf32>
    %487 = vector.shape_cast %486 : vector<8xf32> to vector<8x1xf32>
    %cst_143 = arith.constant 3.125000e-02 : f32
    %488 = vector.broadcast %cst_143 : f32 to vector<8x1xf32>
    %489 = arith.mulf %487, %488 : vector<8x1xf32>
    %490 = arith.mulf %482, %482 : vector<8x128xf32>
    %cst_144 = arith.constant dense<0.000000e+00> : vector<8xf32>
    %491 = vector.multi_reduction <add>, %490, %cst_144 [1] : vector<8x128xf32> to vector<8xf32>
    %492 = vector.shape_cast %491 : vector<8xf32> to vector<8x1xf32>
    %cst_145 = arith.constant 3.125000e-02 : f32
    %493 = vector.broadcast %cst_145 : f32 to vector<8x1xf32>
    %494 = arith.mulf %492, %493 : vector<8x1xf32>
    %495 = arith.mulf %489, %489 : vector<8x1xf32>
    %496 = arith.subf %494, %495 : vector<8x1xf32>
    %cst_146 = arith.constant 0.000000e+00 : f32
    %497 = vector.broadcast %cst_146 : f32 to vector<8x1xf32>
    %498 = arith.maximumf %496, %497 : vector<8x1xf32>
    %499 = vector.broadcast %489 : vector<8x1xf32> to vector<8x128xf32>
    %500 = arith.subf %482, %499 : vector<8x128xf32>
    %cst_147 = arith.constant 9.99999974E-6 : f32
    %501 = vector.broadcast %cst_147 : f32 to vector<8x1xf32>
    %502 = arith.addf %498, %501 : vector<8x1xf32>
    %503 = math.rsqrt %502 : vector<8x1xf32>
    %504 = vector.broadcast %503 : vector<8x1xf32> to vector<8x128xf32>
    %505 = arith.mulf %500, %504 : vector<8x128xf32>
    %506 = vector.broadcast %407 : vector<1x128xf32> to vector<8x128xf32>
    %507 = arith.mulf %505, %506 : vector<8x128xf32>
    %508 = vector.broadcast %408 : vector<1x128xf32> to vector<8x128xf32>
    %509 = arith.addf %507, %508 : vector<8x128xf32>
    %cst_148 = arith.constant 0.000000e+00 : f32
    %510 = vector.broadcast %cst_148 : f32 to vector<8x128xf32>
    %511 = arith.maximumf %509, %510 : vector<8x128xf32>
    %512 = arith.truncf %511 : vector<8x128xf32> to vector<8x128xbf16>
    %cst_149 = arith.constant dense<0.000000e+00> : vector<8x128xf32>
    %513 = tpu.matmul %512, %404, %cst_149 {dimension_numbers = #tpu.dot_dimension_numbers<[1], [0], [0], [1], [0, 0, 1, 1], [], []>} : vector<8x128xbf16>, vector<128x128xbf16>, vector<8x128xf32> -> vector<8x128xf32>
    %514 = vector.broadcast %409 : vector<1x128xf32> to vector<8x128xf32>
    %515 = arith.addf %513, %514 : vector<8x128xf32>
    %cst_150 = arith.constant dense<0.000000e+00> : vector<8xf32>
    %516 = vector.multi_reduction <add>, %515, %cst_150 [1] : vector<8x128xf32> to vector<8xf32>
    %517 = vector.shape_cast %516 : vector<8xf32> to vector<8x1xf32>
    %cst_151 = arith.constant 3.125000e-02 : f32
    %518 = vector.broadcast %cst_151 : f32 to vector<8x1xf32>
    %519 = arith.mulf %517, %518 : vector<8x1xf32>
    %520 = arith.mulf %515, %515 : vector<8x128xf32>
    %cst_152 = arith.constant dense<0.000000e+00> : vector<8xf32>
    %521 = vector.multi_reduction <add>, %520, %cst_152 [1] : vector<8x128xf32> to vector<8xf32>
    %522 = vector.shape_cast %521 : vector<8xf32> to vector<8x1xf32>
    %cst_153 = arith.constant 3.125000e-02 : f32
    %523 = vector.broadcast %cst_153 : f32 to vector<8x1xf32>
    %524 = arith.mulf %522, %523 : vector<8x1xf32>
    %525 = arith.mulf %519, %519 : vector<8x1xf32>
    %526 = arith.subf %524, %525 : vector<8x1xf32>
    %cst_154 = arith.constant 0.000000e+00 : f32
    %527 = vector.broadcast %cst_154 : f32 to vector<8x1xf32>
    %528 = arith.maximumf %526, %527 : vector<8x1xf32>
    %529 = vector.broadcast %519 : vector<8x1xf32> to vector<8x128xf32>
    %530 = arith.subf %515, %529 : vector<8x128xf32>
    %cst_155 = arith.constant 9.99999974E-6 : f32
    %531 = vector.broadcast %cst_155 : f32 to vector<8x1xf32>
    %532 = arith.addf %528, %531 : vector<8x1xf32>
    %533 = math.rsqrt %532 : vector<8x1xf32>
    %534 = vector.broadcast %533 : vector<8x1xf32> to vector<8x128xf32>
    %535 = arith.mulf %530, %534 : vector<8x128xf32>
    %536 = vector.broadcast %410 : vector<1x128xf32> to vector<8x128xf32>
    %537 = arith.mulf %535, %536 : vector<8x128xf32>
    %538 = vector.broadcast %411 : vector<1x128xf32> to vector<8x128xf32>
    %539 = arith.addf %537, %538 : vector<8x128xf32>
    %540 = arith.addf %539, %485 : vector<8x128xf32>
    %cst_156 = arith.constant 0.000000e+00 : f32
    %541 = vector.broadcast %cst_156 : f32 to vector<8x128xf32>
    %542 = arith.maximumf %540, %541 : vector<8x128xf32>
    %543 = arith.maximumf %477, %542 : vector<8x128xf32>
    %c0_157 = arith.constant 0 : index
    %c0_158 = arith.constant 0 : index
    %544 = vector.load %arg15[%c0_157, %c0_158] : memref<8x128xf32, #tpu.memory_space<vmem>>, vector<8x128xf32>
    tpu.vector_store %arg15[%c0_157, %c0_158], %543 {strides = array<i32>} : memref<8x128xf32, #tpu.memory_space<vmem>>, vector<8x128xf32>,
    return
  }
  func.func @transform_0(%arg0: i32) -> (i32, i32) {
    %c0_i32 = arith.constant 0 : i32
    %c0_i32_0 = arith.constant 0 : i32
    return %arg0, %c0_i32 : i32, i32
  }
  func.func @transform_1(%arg0: i32) -> (i32, i32) {
    %c0_i32 = arith.constant 0 : i32
    %c0_i32_0 = arith.constant 0 : i32
    %c0_i32_1 = arith.constant 0 : i32
    return %c0_i32, %c0_i32_0 : i32, i32
  }
  func.func @transform_2(%arg0: i32) -> (i32, i32) {
    %c0_i32 = arith.constant 0 : i32
    %c0_i32_0 = arith.constant 0 : i32
    %c0_i32_1 = arith.constant 0 : i32
    return %c0_i32, %c0_i32_0 : i32, i32
  }
  func.func @transform_3(%arg0: i32) -> (i32, i32) {
    %c0_i32 = arith.constant 0 : i32
    %c0_i32_0 = arith.constant 0 : i32
    %c0_i32_1 = arith.constant 0 : i32
    return %c0_i32, %c0_i32_0 : i32, i32
  }
  func.func @transform_4(%arg0: i32) -> (i32, i32) {
    %c0_i32 = arith.constant 0 : i32
    %c0_i32_0 = arith.constant 0 : i32
    %c0_i32_1 = arith.constant 0 : i32
    return %c0_i32, %c0_i32_0 : i32, i32
  }
  func.func @transform_5(%arg0: i32) -> (i32, i32) {
    %c0_i32 = arith.constant 0 : i32
    %c0_i32_0 = arith.constant 0 : i32
    %c0_i32_1 = arith.constant 0 : i32
    return %c0_i32, %c0_i32_0 : i32, i32
  }
  func.func @transform_6(%arg0: i32) -> (i32, i32) {
    %c0_i32 = arith.constant 0 : i32
    %c0_i32_0 = arith.constant 0 : i32
    %c0_i32_1 = arith.constant 0 : i32
    return %c0_i32, %c0_i32_0 : i32, i32
  }
  func.func @transform_7(%arg0: i32) -> (i32, i32) {
    %c0_i32 = arith.constant 0 : i32
    %c0_i32_0 = arith.constant 0 : i32
    %c0_i32_1 = arith.constant 0 : i32
    return %c0_i32, %c0_i32_0 : i32, i32
  }
  func.func @transform_8(%arg0: i32) -> (i32, i32) {
    %c0_i32 = arith.constant 0 : i32
    %c0_i32_0 = arith.constant 0 : i32
    %c0_i32_1 = arith.constant 0 : i32
    return %c0_i32, %c0_i32_0 : i32, i32
  }
  func.func @transform_9(%arg0: i32) -> (i32, i32) {
    %c0_i32 = arith.constant 0 : i32
    %c0_i32_0 = arith.constant 0 : i32
    %c0_i32_1 = arith.constant 0 : i32
    return %c0_i32, %c0_i32_0 : i32, i32
  }
  func.func @transform_10(%arg0: i32) -> (i32, i32) {
    %c0_i32 = arith.constant 0 : i32
    %c0_i32_0 = arith.constant 0 : i32
    %c0_i32_1 = arith.constant 0 : i32
    return %c0_i32, %c0_i32_0 : i32, i32
  }
  func.func @transform_11(%arg0: i32) -> (i32, i32) {
    %c0_i32 = arith.constant 0 : i32
    %c0_i32_0 = arith.constant 0 : i32
    %c0_i32_1 = arith.constant 0 : i32
    return %c0_i32, %c0_i32_0 : i32, i32
  }
  func.func @transform_12(%arg0: i32) -> (i32, i32) {
    %c0_i32 = arith.constant 0 : i32
    %c0_i32_0 = arith.constant 0 : i32
    return %arg0, %c0_i32 : i32, i32
  }
  func.func @transform_13(%arg0: i32) -> (i32, i32) {
    %c0_i32 = arith.constant 0 : i32
    %c0_i32_0 = arith.constant 0 : i32
    return %arg0, %c0_i32 : i32, i32
  }
  func.func @transform_14(%arg0: i32) -> (i32, i32) {
    %c0_i32 = arith.constant 0 : i32
    %c0_i32_0 = arith.constant 0 : i32
    return %arg0, %c0_i32 : i32, i32
  }
}

</mosaic_0001>

<bundles_post_ra>
// kernel: residual_network_forward.1
= control target key start
LH: loop header
LB: loop body
LE: loop exit
PB: predicated region body
PF: predicated region fallthrough
CT: control target
= control target key end

     0   :  { %20 = vsyncpa [#allocation3], 0  ;;  %s2998_s0 = inlined_call_operand.vmem [shape: bf16[8,512], index: 0, kind: input, shape index: {}]   ;;  %s2999_s1 = inlined_call_operand.vmem [shape: bf16[128,128], index: 1, kind: input, shape index: {}]   ;;  %s3000_s2 = inlined_call_operand.vmem [shape: bf16[128,128], index: 2, kind: input, shape index: {}]   ;;  %s3001_s3 = inlined_call_operand.hbm [shape: f32[8,128], index: 3, kind: input, shape index: {}]   ;;  %s3002_s4 = inlined_call_operand.hbm [shape: bf16[128,256], index: 4, kind: input, shape index: {}]   ;;  %s3003_s5 = inlined_call_operand.hbm [shape: bf16[128,128], index: 5, kind: input, shape index: {}]   ;;  %s3004_s6 = inlined_call_operand.hbm [shape: f32[8,128], index: 6, kind: input, shape index: {}]   ;;  %s3005_s7 = inlined_call_operand.hbm [shape: bf16[128,256], index: 7, kind: input, shape index: {}]   ;;  %s3006_s8 = inlined_call_operand.hbm [shape: bf16[128,128], index: 8, kind: input, shape index: {}]   ;;  %s3007_s9 = inlined_call_operand.hbm [shape: f32[8,128], index: 9, kind: input, shape index: {}]   ;;  %s3008_s10 = inlined_call_operand.hbm [shape: bf16[128,128], index: 10, kind: input, shape index: {}]   ;;  %s3009_s11 = inlined_call_operand.vmem [shape: f32[1,128], index: 11, kind: input, shape index: {}]   ;;  %s3010_s12 = inlined_call_operand.vmem [shape: f32[8,256], index: 12, kind: output, shape index: {0}]   ;;  %s3011_s13 = inlined_call_operand.vmem [shape: f32[8,256], index: 13, kind: output, shape index: {1}]   ;;  %s3012_s14 = inlined_call_operand.vmem [shape: f32[8,128], index: 14, kind: output, shape index: {2}]  }
   0x1   :  { %21 = vsyncpa [#allocation5], 0 }
   0x2   :  { %22 = vsyncpa [#allocation8], 0 }
   0x3   :  { %23 = vsyncpa [#allocation11], 0 }
   0x4   :  { %24 = vsyncpa [#allocation14], 0  ;;  %s2365_s29 = smov [#allocation4]  }
   0x5   :  { %s46_s30 = sshll.u32 %s2365_s29, 4  ;;  %s47_s30 = int_to_ptr.vmem [resolvable:$true] %s46_s30 }
   0x6   :  { %s2203_s15 = scalar_lea.vmem %s47_s30, 2048  ;;  %p2208_p1 = scmp.lt.s32.totalorder %s47_s30, %s47_s30 }
   0x7   :  { %p2204_p0 = scmp.ne.s32.totalorder %s47_s30, %s2203_s15  ;;  %p2209_p2 = scmp.lt.s32.totalorder %s2203_s15, %s2203_s15 }
   0x9   :  { %p2210_p3 = por %p2209_p2, %p2208_p1 }
   0xb   :  { %p2211_p4 = pnand %p2210_p3, %p2204_p0 }
   0xd   :  { %2214 = shalt.err (!%p2211_p4)
}
   0xe   :  { %s2366_s11 = smov 128   ;;  %s2367_s16 = smov 8  }
   0xf   :  { %52 = dma.hbm_to_vmem [thread:$0]  %s3002_s4, 2048, %s47_s30, [#allocation5], %s2366_s11, %s2366_s11, %s2367_s16  }
  0x10   :  { %s2368_s19 = smov [#allocation7]  }
  0x11   :  { %s71_s20 = sshll.u32 %s2368_s19, 4  ;;  %s72_s20 = int_to_ptr.vmem [resolvable:$true] %s71_s20 }
  0x12   :  { %s2223_s21 = scalar_lea.vmem %s72_s20, 128  ;;  %p2228_p6 = scmp.lt.s32.totalorder %s72_s20, %s72_s20 }
  0x13   :  { %p2224_p5 = scmp.ne.s32.totalorder %s72_s20, %s2223_s21  ;;  %p2229_p7 = scmp.lt.s32.totalorder %s2223_s21, %s2223_s21 }
  0x15   :  { %p2230_p8 = por %p2229_p7, %p2228_p6 }
  0x17   :  { %p2231_p9 = pnand %p2230_p8, %p2224_p5 }
  0x19   :  { %2234 = shalt.err (!%p2231_p9)
}
  0x1a   :  { %74 = dma.hbm_to_vmem [thread:$0]  %s3004_s6, 128, %s72_s20, [#allocation8]  }
  0x1b   :  { %s2369_s24 = smov [#allocation10]   ;;  %s2370_s26 = smov [#allocation2]  }
  0x1c   :  { %s92_s25 = sshll.u32 %s2369_s24, 4  ;;  %s37_s27 = sshll.u32 %s2370_s26, 4  ;;  %s93_s25 = int_to_ptr.vmem [resolvable:$true] %s92_s25  ;;  %s38_s27 = int_to_ptr.vmem [resolvable:$true] %s37_s27 }
  0x1d   :  { %s2243_s4 = scalar_lea.vmem %s93_s25, 1024  ;;  %p2248_p11 = scmp.lt.s32.totalorder %s93_s25, %s93_s25 }
  0x1e   :  { %p2244_p10 = scmp.ne.s32.totalorder %s93_s25, %s2243_s4  ;;  %p2249_p12 = scmp.lt.s32.totalorder %s2243_s4, %s2243_s4 }
  0x20   :  { %p2250_p13 = por %p2249_p12, %p2248_p11 }
  0x22   :  { %p2251_p0 = pnand %p2250_p13, %p2244_p10 }
  0x24   :  { %2254 = shalt.err (!%p2251_p0)
}
  0x25   :  { %s2371_s28 = smov 64   ;;  %s2372_s29 = smov 4  }
  0x26   :  { %98 = dma.hbm_to_vmem [thread:$0]  %s3006_s8, 1024, %s93_s25, [#allocation11], %s2371_s28, %s2371_s28, %s2372_s29  }
  0x27   :  { %s2263_s15 = scalar_lea.vmem %s38_s27, 128  ;;  %p2268_p2 = scmp.lt.s32.totalorder %s38_s27, %s38_s27 }
  0x28   :  { %p2264_p1 = scmp.ne.s32.totalorder %s38_s27, %s2263_s15  ;;  %p2269_p3 = scmp.lt.s32.totalorder %s2263_s15, %s2263_s15 }
  0x2a   :  { %p2270_p4 = por %p2269_p3, %p2268_p2 }
  0x2c   :  { %p2271_p5 = pnand %p2270_p4, %p2264_p1 }
  0x2e   :  { %2274 = shalt.err (!%p2271_p5)
}
  0x2f   :  { %40 = dma.hbm_to_vmem [thread:$0]  %s3001_s3, 128, %s38_s27, [#allocation3]  }
  0x30   :  { %s2373_s19 = smov [#allocation6]   ;;  %s2374_s21 = smov [#allocation9]  }
  0x31   :  { %s58_s20 = sshll.u32 %s2373_s19, 4  ;;  %s80_s22 = sshll.u32 %s2374_s21, 4  ;;  %s59_s20 = int_to_ptr.vmem [resolvable:$true] %s58_s20  ;;  %s81_s22 = int_to_ptr.vmem [resolvable:$true] %s80_s22 }
  0x32   :  { %s2283_s23 = scalar_lea.vmem %s59_s20, 1024  ;;  %p2288_p7 = scmp.lt.s32.totalorder %s59_s20, %s59_s20 }
  0x33   :  { %p2284_p6 = scmp.ne.s32.totalorder %s59_s20, %s2283_s23  ;;  %p2289_p8 = scmp.lt.s32.totalorder %s2283_s23, %s2283_s23 }
  0x35   :  { %p2290_p9 = por %p2289_p8, %p2288_p7 }
  0x37   :  { %p2291_p10 = pnand %p2290_p9, %p2284_p6 }
  0x39   :  { %2294 = shalt.err (!%p2291_p10)
}
  0x3a   :  { %64 = dma.hbm_to_vmem [thread:$0]  %s3003_s5, 1024, %s59_s20, [#allocation5], %s2371_s28, %s2371_s28, %s2372_s29  }
  0x3b   :  { %s2303_s3 = scalar_lea.vmem %s81_s22, 2048  ;;  %p2308_p12 = scmp.lt.s32.totalorder %s81_s22, %s81_s22 }
  0x3c   :  { %p2304_p11 = scmp.ne.s32.totalorder %s81_s22, %s2303_s3  ;;  %p2309_p13 = scmp.lt.s32.totalorder %s2303_s3, %s2303_s3 }
  0x3e   :  { %p2310_p0 = por %p2309_p13, %p2308_p12 }
  0x40   :  { %p2311_p1 = pnand %p2310_p0, %p2304_p11 }
  0x42   :  { %2314 = shalt.err (!%p2311_p1)
}
  0x43   :  { %86 = dma.hbm_to_vmem [thread:$0]  %s3005_s7, 2048, %s81_s22, [#allocation8], %s2366_s11, %s2366_s11, %s2367_s16  }
  0x44   :  { %s2375_s27 = smov [#allocation12]   ;;  %s2376_s30 = smov [#allocation13]  }
  0x45   :  { %s105_s4 = sshll.u32 %s2375_s27, 4  ;;  %s114_s6 = sshll.u32 %s2376_s30, 4  ;;  %s106_s4 = int_to_ptr.vmem [resolvable:$true] %s105_s4  ;;  %s115_s6 = int_to_ptr.vmem [resolvable:$true] %s114_s6 }
  0x46   :  { %s2323_s5 = scalar_lea.vmem %s106_s4, 128  ;;  %p2328_p3 = scmp.lt.s32.totalorder %s106_s4, %s106_s4 }
  0x47   :  { %p2324_p2 = scmp.ne.s32.totalorder %s106_s4, %s2323_s5  ;;  %p2329_p4 = scmp.lt.s32.totalorder %s2323_s5, %s2323_s5 }
  0x49   :  { %p2330_p5 = por %p2329_p4, %p2328_p3 }
  0x4b   :  { %p2331_p6 = pnand %p2330_p5, %p2324_p2 }
  0x4d   :  { %2334 = shalt.err (!%p2331_p6)
}
  0x4e   :  { %108 = dma.hbm_to_vmem [thread:$0]  %s3007_s9, 128, %s106_s4, [#allocation11]  }
  0x4f   :  { %s2343_s18 = scalar_lea.vmem %s115_s6, 1024  ;;  %p2348_p8 = scmp.lt.s32.totalorder %s115_s6, %s115_s6 }
  0x50   :  { %p2344_p7 = scmp.ne.s32.totalorder %s115_s6, %s2343_s18  ;;  %p2349_p9 = scmp.lt.s32.totalorder %s2343_s18, %s2343_s18 }
  0x52   :  { %p2350_p10 = por %p2349_p9, %p2348_p8 }
  0x54   :  { %p2351_p11 = pnand %p2350_p10, %p2344_p7 }
  0x56   :  { %2354 = shalt.err (!%p2351_p11)
}
  0x57   :  { %120 = dma.hbm_to_vmem [thread:$0]  %s3008_s10, 1024, %s115_s6, [#allocation14], %s2371_s28, %s2371_s28, %s2372_s29  }
  0x58   :  { %2355 = dma.done.wait [#allocation3], 128  }
  0x59   :  { %2356 = vsyncadd [#allocation3], 4294967168 }
  0x5a   :  { %2357 = dma.done.wait [#allocation5], 3072  }
  0x5b   :  { %2358 = vsyncadd [#allocation5], 4294964224 }
  0x5c   :  { %2359 = dma.done.wait [#allocation8], 2176  }
  0x5d   :  { %2360 = vsyncadd [#allocation8], 4294965120 }
  0x5e   :  { %2361 = dma.done.wait [#allocation11], 1152  }
  0x5f   :  { %2362 = vsyncadd [#allocation11], 4294966144 }
  0x60   :  { %2363 = dma.done.wait [#allocation14], 1024  }
  0x61   :  { %2364 = vsyncadd [#allocation14], 4294966272  ;;  %v2377_v0 = vmov 0.0   ;;  %vm2378_vm0 = vmmov 0   ;;  %v2503_v1 = vld [vmem:[%s2999_s1 + $0x38] sm:$0xff]   ;;  %v2509_v2 = vld [vmem:[%s2999_s1 + $0x30] sm:$0xff]   ;;  %v185_v13 = vlaneseq }
  0x62   :  { %1828 = vmatprep.subr.bf16.mxu0 %v2377_v0  ;;  %1844 = vmatprep.mubr.msk.bf16.mxu0 %vm2378_vm0, %v2377_v0  ;;  %v2516_v3 = vld [vmem:[%s2999_s1 + $0x28] sm:$0xff]   ;;  %v2522_v4 = vld [vmem:[%s2999_s1 + $0x20] sm:$0xff]   ;;  %v2087_v5 = vld [vmem:[%s2999_s1 + $0x18] sm:$0xff]  }
  0x63   :  { %1848 = vmatprep.subr.bf16.mxu1 %v2377_v0  ;;  %1864 = vmatprep.mubr.msk.bf16.mxu1 %vm2378_vm0, %v2377_v0  ;;  %v2088_v6 = vld [vmem:[%s2999_s1 + $0x10] sm:$0xff]   ;;  %v2089_v7 = vld [vmem:[%s2999_s1 + $0x8] sm:$0xff]   ;;  %v2090_v8 = vld [vmem:[%s2999_s1] sm:$0xff]   ;;  %v2609_v14 = vshrl.u32 %v185_v13, 7 }
  0x64   :  { %1829 = vmatpush3.bf16.msra.mxu0 %v2503_v1  ;;  %v2546_v9 = vld [vmem:[%s2998_s0] sm:$0xf]  ;;  %v2566_v10 = vld [vmem:[%s2998_s0 + $0x4] sm:$0xf]  ;;  %v2586_v11 = vld [vmem:[%s2998_s0 + $0x8] sm:$0xf] }
  0x65   :  { %1830 = vmatprep.subr.bf16.mxu0 %v2377_v0  ;;  %v2606_v12 = vld [vmem:[%s2998_s0 + $0xc] sm:$0xf]  ;;  %v2612_v15 = vsub.s32 0, %v2609_v14  ;;  %v2614_v16 = vld [vmem:[#allocation2] sm:$0xff]  ;;  %v2626_v24 = vld [vmem:[%s3000_s2 + $0x38] sm:$0xff]   ;;  %v2695_v58 = vsub.s32 1, %v2609_v14 }
  0x66   :  { %1849 = vmatpush3.bf16.msra.mxu1 %v2626_v24  ;;  %v2633_v25 = vld [vmem:[%s3000_s2 + $0x30] sm:$0xff]   ;;  %v2640_v26 = vld [vmem:[%s3000_s2 + $0x28] sm:$0xff]   ;;  %v2646_v27 = vld [vmem:[%s3000_s2 + $0x20] sm:$0xff]   ;;  %v2698_v59 = vsub.s32 2, %v2609_v14 }
  0x67   :  { %v188_v17 = vrot.slane %v2614_v16, %v2612_v15  ;;  %1850 = vmatprep.subr.bf16.mxu1 %v2377_v0  ;;  %v2653_v28 = vld [vmem:[%s3000_s2 + $0x18] sm:$0xff]   ;;  %v2662_v31 = vld [vmem:[%s3000_s2 + $0x10] sm:$0xff]   ;;  %v2672_v35 = vld [vmem:[%s3000_s2 + $0x8] sm:$0xff]   ;;  %v2703_v61 = vrot.slane %v2614_v16, %v2695_v58 }
  0x68   :  { %1831 = vmatpush3.bf16.msra.mxu0 %v2509_v2  ;;  %v2680_v37 = vld [vmem:[%s3000_s2] sm:$0xff]  }
  0x69   :  { %1832 = vmatprep.subr.bf16.mxu0 %v2377_v0 }
  0x6a   :  { %1851 = vmatpush3.bf16.msra.mxu1 %v2633_v25 }
  0x6b   :  { %1852 = vmatprep.subr.bf16.mxu1 %v2377_v0 }
  0x6c   :  { %1833 = vmatpush3.bf16.msra.mxu0 %v2516_v3 }
  0x6d   :  { %1834 = vmatprep.subr.bf16.mxu0 %v2377_v0 }
  0x6e   :  { %1853 = vmatpush3.bf16.msra.mxu1 %v2640_v26 }
  0x6f   :  { %1854 = vmatprep.subr.bf16.mxu1 %v2377_v0 }
  0x70   :  { %1835 = vmatpush3.bf16.msra.mxu0 %v2522_v4 }
  0x71   :  { %1836 = vmatprep.subr.bf16.mxu0 %v2377_v0 }
  0x72   :  { %1855 = vmatpush3.bf16.msra.mxu1 %v2646_v27 }
  0x73   :  { %1856 = vmatprep.subr.bf16.mxu1 %v2377_v0 }
  0x74   :  { %1837 = vmatpush3.bf16.msra.mxu0 %v2087_v5 }
  0x75   :  { %1838 = vmatprep.subr.bf16.mxu0 %v2377_v0 }
  0x76   :  { %1857 = vmatpush3.bf16.msra.mxu1 %v2653_v28 }
  0x77   :  { %1858 = vmatprep.subr.bf16.mxu1 %v2377_v0 }
  0x78   :  { %1839 = vmatpush3.bf16.msra.mxu0 %v2088_v6 }
  0x79   :  { %1840 = vmatprep.subr.bf16.mxu0 %v2377_v0 }
  0x7a   :  { %1859 = vmatpush3.bf16.msra.mxu1 %v2662_v31 }
  0x7b   :  { %1860 = vmatprep.subr.bf16.mxu1 %v2377_v0 }
  0x7c   :  { %1841 = vmatpush3.bf16.msra.mxu0 %v2089_v7 }
  0x7d   :  { %1842 = vmatprep.subr.bf16.mxu0 %v2377_v0 }
  0x7e   :  { %1861 = vmatpush3.bf16.msra.mxu1 %v2672_v35 }
  0x7f   :  { %1862 = vmatprep.subr.bf16.mxu1 %v2377_v0 }
  0x80   :  { %1843 = vmatpush3.bf16.msra.mxu0 %v2090_v8 }
  0x81   :  { %1868 = vmatprep.subr.bf16.mxu0 %v2377_v0 }
  0x82   :  { %1863 = vmatpush3.bf16.msra.mxu1 %v2680_v37 }
  0x83   :  { %1845 = vmatmul.mubr.bf16.vlgmr.msra.gmra.mxu0 %v2546_v9  ;;  %1888 = vmatprep.subr.bf16.mxu1 %v2377_v0 }
  0x84   :  { %1869 = vmatpush3.bf16.msra.mxu0 %v2503_v1  ;;  %1884 = vmatprep.mubr.msk.bf16.mxu0 %vm2378_vm0, %v2377_v0 }
  0x85   :  { %1870 = vmatprep.subr.bf16.mxu0 %v2377_v0 }
  0x88   :  { %1871 = vmatpush3.bf16.msra.mxu0 %v2509_v2 }
  0x89   :  { %1872 = vmatprep.subr.bf16.mxu0 %v2377_v0 }
  0x8c   :  { %1873 = vmatpush3.bf16.msra.mxu0 %v2516_v3 }
  0x8d   :  { %1874 = vmatprep.subr.bf16.mxu0 %v2377_v0 }
  0x90   :  { %1875 = vmatpush3.bf16.msra.mxu0 %v2522_v4 }
  0x91   :  { %1876 = vmatprep.subr.bf16.mxu0 %v2377_v0 }
  0x94   :  { %1877 = vmatpush3.bf16.msra.mxu0 %v2087_v5 }
  0x95   :  { %1878 = vmatprep.subr.bf16.mxu0 %v2377_v0 }
  0x98   :  { %1879 = vmatpush3.bf16.msra.mxu0 %v2088_v6 }
  0x99   :  { %1880 = vmatprep.subr.bf16.mxu0 %v2377_v0 }
  0x9c   :  { %1881 = vmatpush3.bf16.msra.mxu0 %v2089_v7 }
  0x9d   :  { %1882 = vmatprep.subr.bf16.mxu0 %v2377_v0 }
  0xa0   :  { %1883 = vmatpush3.bf16.msra.mxu0 %v2090_v8 }
  0xa1   :  { %1908 = vmatprep.subr.bf16.mxu0 %v2377_v0 }
  0xa3   :  { %1885 = vmatmul.mubr.bf16.vlgmr.msra.gmra.mxu0 %v2566_v10 }
  0xa4   :  { %1909 = vmatpush3.bf16.msra.mxu0 %v2503_v1  ;;  %1924 = vmatprep.mubr.msk.bf16.mxu0 %vm2378_vm0, %v2377_v0 }
  0xa5   :  { %1910 = vmatprep.subr.bf16.mxu0 %v2377_v0 }
  0xa8   :  { %1911 = vmatpush3.bf16.msra.mxu0 %v2509_v2 }
  0xa9   :  { %1912 = vmatprep.subr.bf16.mxu0 %v2377_v0 }
  0xac   :  { %1913 = vmatpush3.bf16.msra.mxu0 %v2516_v3 }
  0xad   :  { %1914 = vmatprep.subr.bf16.mxu0 %v2377_v0 }
  0xb0   :  { %1915 = vmatpush3.bf16.msra.mxu0 %v2522_v4 }
  0xb1   :  { %1916 = vmatprep.subr.bf16.mxu0 %v2377_v0 }
  0xb4   :  { %1917 = vmatpush3.bf16.msra.mxu0 %v2087_v5 }
  0xb5   :  { %1918 = vmatprep.subr.bf16.mxu0 %v2377_v0 }
  0xb8   :  { %1919 = vmatpush3.bf16.msra.mxu0 %v2088_v6 }
  0xb9   :  { %1920 = vmatprep.subr.bf16.mxu0 %v2377_v0 }
  0xbc   :  { %1921 = vmatpush3.bf16.msra.mxu0 %v2089_v7 }
  0xbd   :  { %1922 = vmatprep.subr.bf16.mxu0 %v2377_v0 }
  0xc0   :  { %1923 = vmatpush3.bf16.msra.mxu0 %v2090_v8 }
  0xc1   :  { %1948 = vmatprep.subr.bf16.mxu0 %v2377_v0 }
  0xc3   :  { %1925 = vmatmul.mubr.bf16.vlgmr.msra.gmra.mxu0 %v2586_v11 }
  0xc4   :  { %1949 = vmatpush3.bf16.msra.mxu0 %v2503_v1  ;;  %1964 = vmatprep.mubr.msk.bf16.mxu0 %vm2378_vm0, %v2377_v0  ;;  %v2707_v1 = vrot.slane %v2614_v16, %v2698_v59 }
  0xc5   :  { %1950 = vmatprep.subr.bf16.mxu0 %v2377_v0 }
  0xc8   :  { %1951 = vmatpush3.bf16.msra.mxu0 %v2509_v2 }
  0xc9   :  { %1952 = vmatprep.subr.bf16.mxu0 %v2377_v0 }
  0xcc   :  { %1953 = vmatpush3.bf16.msra.mxu0 %v2516_v3 }
  0xcd   :  { %1954 = vmatprep.subr.bf16.mxu0 %v2377_v0 }
  0xd0   :  { %1955 = vmatpush3.bf16.msra.mxu0 %v2522_v4 }
  0xd1   :  { %1956 = vmatprep.subr.bf16.mxu0 %v2377_v0 }
  0xd4   :  { %1957 = vmatpush3.bf16.msra.mxu0 %v2087_v5 }
  0xd5   :  { %1958 = vmatprep.subr.bf16.mxu0 %v2377_v0 }
  0xd8   :  { %1959 = vmatpush3.bf16.msra.mxu0 %v2088_v6 }
  0xd9   :  { %1960 = vmatprep.subr.bf16.mxu0 %v2377_v0 }
  0xdc   :  { %1961 = vmatpush3.bf16.msra.mxu0 %v2089_v7 }
  0xdd   :  { %1962 = vmatprep.subr.bf16.mxu0 %v2377_v0 }
  0xe0   :  { %1963 = vmatpush3.bf16.msra.mxu0 %v2090_v8 }
  0xe3   :  { %1965 = vmatmul.mubr.bf16.vlgmr.msra.gmra.mxu0 %v2606_v12 }
 0x143   :  { %v271_v18 = vpop.f32.mrf.mxu0 }
 0x144   :  { %v2618_v19 = vadd.f32 %v271_v18, %v188_v17 }
 0x145   :  { %v1846_v20 = vpop.f32.mrf.mxu0 }
 0x146   :  { %278 = vadd.xlane.f32.xlu0 %v2618_v19  ;;  %v281_v22 = vmul.f32 %v2618_v19, %v2618_v19 }
 0x147   :  { %v274_v21 = vpop.f32.mrf.mxu0 }
 0x149   :  { %v1847_v23 = vpop.f32.mrf.mxu0 }
 0x14a   :  { %282 = vadd.xlane.f32.xlu0 %v281_v22 }
 0x163   :  { %v456_v29 = vpop.f32.mrf.mxu0 }
 0x164   :  { %v2656_v30 = vadd.f32 %v456_v29, %v188_v17 }
 0x165   :  { %v1886_v32 = vpop.f32.mrf.mxu0 }
 0x166   :  { %463 = vadd.xlane.f32.xlu1 %v2656_v30  ;;  %v466_v34 = vmul.f32 %v2656_v30, %v2656_v30 }
 0x167   :  { %v459_v33 = vpop.f32.mrf.mxu0 }
 0x169   :  { %v1887_v36 = vpop.f32.mrf.mxu0 }
 0x16a   :  { %467 = vadd.xlane.f32.xlu1 %v466_v34 }
 0x183   :  { %v573_v38 = vpop.f32.mrf.mxu0 }
 0x184   :  { %v2684_v39 = vadd.f32 %v573_v38, %v188_v17 }
 0x185   :  { %v1926_v40 = vpop.f32.mrf.mxu0 }
 0x186   :  { %580 = vadd.xlane.f32.xlu0 %v2684_v39  ;;  %v583_v41 = vmul.f32 %v2684_v39, %v2684_v39 }
 0x187   :  { %v576_v42 = vpop.f32.mrf.mxu0 }
 0x188   :  { %584 = vadd.xlane.f32.xlu1 %v583_v41 }
 0x189   :  { %v1927_v43 = vpop.f32.mrf.mxu0 }
 0x1a3   :  { %v690_v44 = vpop.f32.mrf.mxu0 }
 0x1a4   :  { %v2689_v45 = vadd.f32 %v690_v44, %v188_v17 }
 0x1a5   :  { %v1966_v46 = vpop.f32.mrf.mxu0 }
 0x1a6   :  { %697 = vadd.xlane.f32.xlu0 %v2689_v45  ;;  %v700_v47 = vmul.f32 %v2689_v45, %v2689_v45 }
 0x1a7   :  { %v693_v48 = vpop.f32.mrf.mxu0 }
 0x1a8   :  { %701 = vadd.xlane.f32.xlu1 %v700_v47 }
 0x1a9   :  { %v1967_v49 = vpop.f32.mrf.mxu0 }
 0x1cf   :  { %v279_v50 = vpop.xlane.xlu0 %278 }
 0x1d0   :  { %v280_v51 = vmul.f32 0.03125, %v279_v50 }
 0x1d2   :  { %v285_v53 = vmul.f32 %v280_v51, %v280_v51  ;;  %v288_v60 = vsub.f32 %v2618_v19, %v280_v51 }
 0x1d3   :  { %v283_v52 = vpop.xlane.xlu0 %282 }
 0x1d4   :  { %v284_v54 = vmul.f32 0.03125, %v283_v52 }
 0x1d6   :  { %v286_v55 = vsub.f32 %v284_v54, %v285_v53 }
 0x1d8   :  { %v287_v56 = vmax.f32 %v286_v55, 0.0 }
 0x1da   :  { %v289_v57 = vadd.f32 1e-05, %v287_v56 }
 0x1dc   :  { %2163 = vrsqrt.f32 %v289_v57 }
 0x1e9   :  { %v2164_v62 = vpop.eup %2163 }
 0x1ea   :  { %v291_v63 = vmul.f32 %v2164_v62, %v288_v60 }
 0x1ec   :  { %v296_v2 = vmul.f32 %v2703_v61, %v291_v63 }
 0x1ee   :  { %v301_v3 = vadd.f32 %v2707_v1, %v296_v2 }
 0x1ef   :  { %v464_v4 = vpop.xlane.xlu1 %463 }
 0x1f0   :  { %v465_v5 = vmul.f32 0.03125, %v464_v4  ;;  %v302_v6 = vmax.f32 %v301_v3, 0.0 }
 0x1f2   :  { %v303_v7 = vpack.c.bf16 %v302_v6, %v302_v6  ;;  %v470_v13 = vmul.f32 %v465_v5, %v465_v5  ;;  %v473_v21 = vsub.f32 %v2656_v30, %v465_v5 }
 0x1f3   :  { %v468_v8 = vpop.xlane.xlu1 %467 }
 0x1f4   :  { %v469_v17 = vmul.f32 0.03125, %v468_v8  ;;  %1865 = vmatmul.mubr.bf16.vlgmr.msra.gmra.mxu1 %v303_v7 }
 0x1f5   :  { %1889 = vmatpush3.bf16.msra.mxu1 %v2626_v24  ;;  %1904 = vmatprep.mubr.msk.bf16.mxu1 %vm2378_vm0, %v2377_v0 }
 0x1f6   :  { %v471_v18 = vsub.f32 %v469_v17, %v470_v13  ;;  %1890 = vmatprep.subr.bf16.mxu1 %v2377_v0 }
 0x1f8   :  { %v472_v19 = vmax.f32 %v471_v18, 0.0  ;;  %v2101_v18 = vld [vmem:[#allocation4 + $0x74] ss:$8 sps:$4 sm:$0xff]  }
 0x1f9   :  { %1891 = vmatpush3.bf16.msra.mxu1 %v2633_v25  ;;  %891 = vmatprep.subr.bf16.mxu0 %v2101_v18 }
 0x1fa   :  { %v474_v20 = vadd.f32 1e-05, %v472_v19  ;;  %1892 = vmatprep.subr.bf16.mxu1 %v2377_v0  ;;  %v2791_v19 = vld [vmem:[#allocation4 + $0x70] ss:$8 sps:$4 sm:$0xff]  }
 0x1fb   :  { %892 = vmatpush1.bf16.msra.mxu0 %v2791_v19 }
 0x1fc   :  { %2165 = vrsqrt.f32 %v474_v20  ;;  %v2794_v20 = vld [vmem:[#allocation4 + $0x64] ss:$8 sps:$4 sm:$0xff]  }
 0x1fd   :  { %1893 = vmatpush3.bf16.msra.mxu1 %v2640_v26  ;;  %893 = vmatprep.subr.bf16.mxu0 %v2794_v20 }
 0x1fe   :  { %1894 = vmatprep.subr.bf16.mxu1 %v2377_v0 }
 0x201   :  { %1895 = vmatpush3.bf16.msra.mxu1 %v2646_v27 }
 0x202   :  { %1896 = vmatprep.subr.bf16.mxu1 %v2377_v0 }
 0x205   :  { %1897 = vmatpush3.bf16.msra.mxu1 %v2653_v28 }
 0x206   :  { %1898 = vmatprep.subr.bf16.mxu1 %v2377_v0 }
 0x209   :  { %v2166_v22 = vpop.eup %2165  ;;  %1899 = vmatpush3.bf16.msra.mxu1 %v2662_v31 }
 0x20a   :  { %1900 = vmatprep.subr.bf16.mxu1 %v2377_v0  ;;  %v476_v23 = vmul.f32 %v2166_v22, %v473_v21  ;;  %v2796_v21 = vld [vmem:[#allocation4 + $0x60] ss:$8 sps:$4 sm:$0xff]   ;;  %v2798_v22 = vld [vmem:[#allocation4 + $0x54] ss:$8 sps:$4 sm:$0xff]  }
 0x20b   :  { %894 = vmatpush1.bf16.msra.mxu0 %v2796_v21 }
 0x20c   :  { %v477_v29 = vmul.f32 %v476_v23, %v2703_v61  ;;  %v2802_v23 = vld [vmem:[#allocation4 + $0x50] ss:$8 sps:$4 sm:$0xff]   ;;  %895 = vmatprep.subr.bf16.mxu0 %v2798_v22 }
 0x20d   :  { %1901 = vmatpush3.bf16.msra.mxu1 %v2672_v35 }
 0x20e   :  { %1902 = vmatprep.subr.bf16.mxu1 %v2377_v0  ;;  %v478_v32 = vadd.f32 %v477_v29, %v2707_v1  ;;  %v2805_v29 = vld [vmem:[#allocation4 + $0x44] ss:$8 sps:$4 sm:$0xff]  }
 0x20f   :  { %v581_v33 = vpop.xlane.xlu0 %580  ;;  %896 = vmatpush1.bf16.msra.mxu0 %v2802_v23 }
 0x210   :  { %v582_v34 = vmul.f32 0.03125, %v581_v33  ;;  %v479_v36 = vmax.f32 %v478_v32, 0.0  ;;  %v2808_v32 = vld [vmem:[#allocation4 + $0x40] ss:$8 sps:$4 sm:$0xff]   ;;  %897 = vmatprep.subr.bf16.mxu0 %v2805_v29 }
 0x211   :  { %1903 = vmatpush3.bf16.msra.mxu1 %v2680_v37  ;;  %v585_v30 = vpop.xlane.xlu1 %584 }
 0x212   :  { %v587_v38 = vmul.f32 %v582_v34, %v582_v34  ;;  %v586_v40 = vmul.f32 0.03125, %v585_v30  ;;  %1928 = vmatprep.subr.bf16.mxu1 %v2377_v0  ;;  %v480_v41 = vpack.c.bf16 %v479_v36, %v479_v36  ;;  %v590_v46 = vsub.f32 %v2684_v39, %v582_v34  ;;  %v2811_v34 = vld [vmem:[#allocation4 + $0x34] ss:$8 sps:$4 sm:$0xff]  }
 0x213   :  { %898 = vmatpush1.bf16.msra.mxu0 %v2808_v32 }
 0x214   :  { %v588_v42 = vsub.f32 %v586_v40, %v587_v38  ;;  %1905 = vmatmul.mubr.bf16.vlgmr.msra.gmra.mxu1 %v480_v41  ;;  %v2817_v38 = vld [vmem:[#allocation4 + $0x30] ss:$8 sps:$4 sm:$0xff]   ;;  %899 = vmatprep.subr.bf16.mxu0 %v2811_v34  ;;  %v2820_v41 = vld [vmem:[#allocation4 + $0x24] ss:$8 sps:$4 sm:$0xff]  }
 0x215   :  { %1929 = vmatpush3.bf16.msra.mxu1 %v2626_v24  ;;  %1944 = vmatprep.mubr.msk.bf16.mxu1 %vm2378_vm0, %v2377_v0 }
 0x216   :  { %v589_v43 = vmax.f32 %v588_v42, 0.0  ;;  %1930 = vmatprep.subr.bf16.mxu1 %v2377_v0 }
 0x217   :  { %900 = vmatpush1.bf16.msra.mxu0 %v2817_v38 }
 0x218   :  { %v591_v44 = vadd.f32 1e-05, %v589_v43  ;;  %901 = vmatprep.subr.bf16.mxu0 %v2820_v41 }
 0x219   :  { %1931 = vmatpush3.bf16.msra.mxu1 %v2633_v25 }
 0x21a   :  { %2167 = vrsqrt.f32 %v591_v44  ;;  %1932 = vmatprep.subr.bf16.mxu1 %v2377_v0  ;;  %v2825_v44 = vld [vmem:[#allocation4 + $0x20] ss:$8 sps:$4 sm:$0xff]  }
 0x21b   :  { %902 = vmatpush1.bf16.msra.mxu0 %v2825_v44 }
 0x21d   :  { %1933 = vmatpush3.bf16.msra.mxu1 %v2640_v26 }
 0x21e   :  { %1934 = vmatprep.subr.bf16.mxu1 %v2377_v0 }
 0x221   :  { %1935 = vmatpush3.bf16.msra.mxu1 %v2646_v27 }
 0x222   :  { %1936 = vmatprep.subr.bf16.mxu1 %v2377_v0 }
 0x225   :  { %1937 = vmatpush3.bf16.msra.mxu1 %v2653_v28 }
 0x226   :  { %1938 = vmatprep.subr.bf16.mxu1 %v2377_v0 }
 0x227   :  { %v2168_v47 = vpop.eup %2167 }
 0x228   :  { %v593_v48 = vmul.f32 %v2168_v47, %v590_v46  ;;  %v2829_v46 = vld [vmem:[#allocation4 + $0x14] ss:$8 sps:$4 sm:$0xff]   ;;  %v2831_v47 = vld [vmem:[#allocation4 + $0x10] ss:$8 sps:$4 sm:$0xff]  }
 0x229   :  { %1939 = vmatpush3.bf16.msra.mxu1 %v2662_v31  ;;  %903 = vmatprep.subr.bf16.mxu0 %v2829_v46 }
 0x22a   :  { %1940 = vmatprep.subr.bf16.mxu1 %v2377_v0  ;;  %v594_v49 = vmul.f32 %v593_v48, %v2703_v61  ;;  %904 = vmatpush1.bf16.msra.mxu0 %v2831_v47  ;;  %v2835_v48 = vld [vmem:[#allocation4 + $0x4] ss:$8 sps:$4 sm:$0xff]  }
 0x22b   :  { %905 = vmatprep.subr.bf16.mxu0 %v2835_v48 }
 0x22c   :  { %v595_v50 = vadd.f32 %v594_v49, %v2707_v1  ;;  %v2837_v49 = vld [vmem:[#allocation4] ss:$8 sps:$4 sm:$0xff]  }
 0x22d   :  { %1941 = vmatpush3.bf16.msra.mxu1 %v2672_v35 }
 0x22e   :  { %1942 = vmatprep.subr.bf16.mxu1 %v2377_v0  ;;  %v596_v51 = vmax.f32 %v595_v50, 0.0  ;;  %906 = vmatpush1.bf16.msra.mxu0 %v2837_v49  ;;  %v2379_v50 = vmov 0  }
 0x22f   :  { %v698_v52 = vpop.xlane.xlu0 %697  ;;  %1087 = vmatprep.subr.bf16.mxu0 %v2101_v18  ;;  %923 = vmatprep.mubr.bf16.mxu0 %v2379_v50 }
 0x230   :  { %v699_v53 = vmul.f32 0.03125, %v698_v52  ;;  %v597_v39 = vpack.c.bf16 %v596_v51, %v596_v51 }
 0x231   :  { %1943 = vmatpush3.bf16.msra.mxu1 %v2680_v37  ;;  %v702_v54 = vpop.xlane.xlu1 %701 }
 0x232   :  { %v704_v55 = vmul.f32 %v699_v53, %v699_v53  ;;  %v703_v56 = vmul.f32 0.03125, %v702_v54  ;;  %1968 = vmatprep.subr.bf16.mxu1 %v2377_v0 }
 0x234   :  { %v705_v57 = vsub.f32 %v703_v56, %v704_v55  ;;  %1945 = vmatmul.mubr.bf16.vlgmr.msra.gmra.mxu1 %v597_v39 }
 0x235   :  { %1969 = vmatpush3.bf16.msra.mxu1 %v2626_v24  ;;  %1984 = vmatprep.mubr.msk.bf16.mxu1 %vm2378_vm0, %v2377_v0  ;;  %v707_v24 = vsub.f32 %v2689_v45, %v699_v53 }
 0x236   :  { %v706_v60 = vmax.f32 %v705_v57, 0.0  ;;  %1970 = vmatprep.subr.bf16.mxu1 %v2377_v0 }
 0x238   :  { %v708_v62 = vadd.f32 1e-05, %v706_v60 }
 0x239   :  { %1971 = vmatpush3.bf16.msra.mxu1 %v2633_v25 }
 0x23a   :  { %2169 = vrsqrt.f32 %v708_v62  ;;  %1972 = vmatprep.subr.bf16.mxu1 %v2377_v0 }
 0x23d   :  { %1973 = vmatpush3.bf16.msra.mxu1 %v2640_v26 }
 0x23e   :  { %1974 = vmatprep.subr.bf16.mxu1 %v2377_v0 }
 0x241   :  { %1975 = vmatpush3.bf16.msra.mxu1 %v2646_v27 }
 0x242   :  { %1976 = vmatprep.subr.bf16.mxu1 %v2377_v0 }
 0x245   :  { %1977 = vmatpush3.bf16.msra.mxu1 %v2653_v28 }
 0x246   :  { %1978 = vmatprep.subr.bf16.mxu1 %v2377_v0 }
 0x247   :  { %v2170_v63 = vpop.eup %2169 }
 0x248   :  { %v710_v2 = vmul.f32 %v2170_v63, %v707_v24 }
 0x249   :  { %1979 = vmatpush3.bf16.msra.mxu1 %v2662_v31  ;;  %v2777_v31 = vsub.s32 3, %v2609_v14 }
 0x24a   :  { %1980 = vmatprep.subr.bf16.mxu1 %v2377_v0  ;;  %v711_v25 = vmul.f32 %v710_v2, %v2703_v61 }
 0x24b   :  { %v307_v45 = vrot.slane %v2614_v16, %v2777_v31 }
 0x24c   :  { %v712_v26 = vadd.f32 %v711_v25, %v2707_v1 }
 0x24d   :  { %1981 = vmatpush3.bf16.msra.mxu1 %v2672_v35 }
 0x24e   :  { %1982 = vmatprep.subr.bf16.mxu1 %v2377_v0  ;;  %v713_v27 = vmax.f32 %v712_v26, 0.0 }
 0x250   :  { %v714_v28 = vpack.c.bf16 %v713_v27, %v713_v27 }
 0x251   :  { %1983 = vmatpush3.bf16.msra.mxu1 %v2680_v37 }
 0x252   :  { %1988 = vmatprep.subr.bf16.mxu1 %v2377_v0 }
 0x254   :  { %1985 = vmatmul.mubr.bf16.vlgmr.msra.gmra.mxu1 %v714_v28 }
 0x255   :  { %2004 = vmatprep.mubr.msk.bf16.mxu1 %vm2378_vm0, %v2377_v0 }
 0x2b4   :  { %v390_v61 = vpop.f32.mrf.mxu1 }
 0x2b5   :  { %v2781_v35 = vadd.f32 %v390_v61, %v307_v45 }
 0x2b6   :  { %v1866_v1 = vpop.f32.mrf.mxu1 }
 0x2b7   :  { %396 = vadd.xlane.f32.xlu0 %v2781_v35  ;;  %v399_v37 = vmul.f32 %v2781_v35, %v2781_v35 }
 0x2b8   :  { %v393_v3 = vpop.f32.mrf.mxu1 }
 0x2ba   :  { %v1867_v4 = vpop.f32.mrf.mxu1 }
 0x2bb   :  { %400 = vadd.xlane.f32.xlu0 %v399_v37  ;;  %v2848_v4 = vsub.s32 4, %v2609_v14 }
 0x2d4   :  { %v515_v5 = vpop.f32.mrf.mxu1 }
 0x2d5   :  { %v2786_v6 = vadd.f32 %v515_v5, %v307_v45 }
 0x2d6   :  { %v1906_v7 = vpop.f32.mrf.mxu1 }
 0x2d7   :  { %521 = vadd.xlane.f32.xlu1 %v2786_v6  ;;  %v524_v13 = vmul.f32 %v2786_v6, %v2786_v6 }
 0x2d8   :  { %v518_v8 = vpop.f32.mrf.mxu1 }
 0x2da   :  { %v1907_v17 = vpop.f32.mrf.mxu1 }
 0x2db   :  { %525 = vadd.xlane.f32.xlu1 %v524_v13  ;;  %v2853_v13 = vrot.slane %v2614_v16, %v2848_v4  ;;  %v2856_v17 = vsub.s32 5, %v2609_v14 }
 0x2f4   :  { %v632_v33 = vpop.f32.mrf.mxu1 }
 0x2f5   :  { %v2813_v36 = vadd.f32 %v632_v33, %v307_v45  ;;  %v2861_v33 = vrot.slane %v2614_v16, %v2856_v17 }
 0x2f6   :  { %v1946_v30 = vpop.f32.mrf.mxu1 }
 0x2f7   :  { %638 = vadd.xlane.f32.xlu0 %v2813_v36  ;;  %v641_v42 = vmul.f32 %v2813_v36, %v2813_v36 }
 0x2f8   :  { %v635_v40 = vpop.f32.mrf.mxu1 }
 0x2fa   :  { %v1947_v43 = vpop.f32.mrf.mxu1 }
 0x2fb   :  { %642 = vadd.xlane.f32.xlu0 %v641_v42  ;;  %v277_v42 = vunpack.c.l.bf16 %v2546_v9 }
 0x314   :  { %v749_v51 = vpop.f32.mrf.mxu1 }
 0x315   :  { %v2842_v52 = vadd.f32 %v749_v51, %v307_v45  ;;  %v462_v51 = vunpack.c.l.bf16 %v2566_v10 }
 0x316   :  { %v1986_v53 = vpop.f32.mrf.mxu1 }
 0x317   :  { %755 = vadd.xlane.f32.xlu1 %v2842_v52  ;;  %v758_v54 = vmul.f32 %v2842_v52, %v2842_v52 }
 0x318   :  { %v752_v39 = vpop.f32.mrf.mxu1 }
 0x31a   :  { %v1987_v55 = vpop.f32.mrf.mxu1 }
 0x31b   :  { %759 = vadd.xlane.f32.xlu1 %v758_v54 }
 0x340   :  { %v397_v56 = vpop.xlane.xlu0 %396 }
 0x341   :  { %v398_v60 = vmul.f32 0.03125, %v397_v56 }
 0x343   :  { %v403_v24 = vmul.f32 %v398_v60, %v398_v60  ;;  %v406_v7 = vsub.f32 %v2781_v35, %v398_v60 }
 0x344   :  { %v401_v57 = vpop.xlane.xlu0 %400 }
 0x345   :  { %v402_v62 = vmul.f32 0.03125, %v401_v57 }
 0x347   :  { %v404_v63 = vsub.f32 %v402_v62, %v403_v24 }
 0x349   :  { %v405_v2 = vmax.f32 %v404_v63, 0.0 }
 0x34b   :  { %v407_v25 = vadd.f32 1e-05, %v405_v2 }
 0x34d   :  { %2171 = vrsqrt.f32 %v407_v25 }
 0x35a   :  { %v2172_v5 = vpop.eup %2171 }
 0x35b   :  { %v409_v8 = vmul.f32 %v2172_v5, %v406_v7 }
 0x35d   :  { %v414_v18 = vmul.f32 %v2853_v13, %v409_v8 }
 0x35f   :  { %v419_v35 = vadd.f32 %v2861_v33, %v414_v18 }
 0x360   :  { %v522_v26 = vpop.xlane.xlu1 %521 }
 0x361   :  { %v523_v27 = vmul.f32 0.03125, %v522_v26  ;;  %v420_v39 = vadd.f32 %v419_v35, %v277_v42  ;;  %v2124_v42 = vld [vmem:[#allocation6 + $0x30] sm:$0xff]   ;;  %v2125_v35 = vld [vmem:[#allocation6 + $0x28] sm:$0xff]  }
 0x363   :  { %v528_v45 = vmul.f32 %v523_v27, %v523_v27  ;;  %v531_v30 = vsub.f32 %v2786_v6, %v523_v27  ;;  %v421_v16 = vmax.f32 %v420_v39, 0.0  ;;  %v2129_v39 = vld [vmem:[#allocation6 + $0x8] sm:$0xff]  }
 0x364   :  { %v526_v28 = vpop.xlane.xlu1 %525 }
 0x365   :  { %v527_v61 = vmul.f32 0.03125, %v526_v28  ;;  %v579_v28 = vunpack.c.l.bf16 %v2586_v11  ;;  %v2900_v11 = vld [vmem:[#allocation7] sm:$0xff] }
 0x367   :  { %v529_v1 = vsub.f32 %v527_v61, %v528_v45  ;;  %v696_v61 = vunpack.c.l.bf16 %v2606_v12  ;;  %v935_v12 = vrot.slane %v2900_v11, %v2612_v15 }
 0x369   :  { %v530_v3 = vmax.f32 %v529_v1, 0.0 }
 0x36b   :  { %v532_v37 = vadd.f32 1e-05, %v530_v3 }
 0x36d   :  { %2173 = vrsqrt.f32 %v532_v37 }
 0x37a   :  { %v2174_v40 = vpop.eup %2173 }
 0x37b   :  { %v534_v43 = vmul.f32 %v2174_v40, %v531_v30  ;;  %v2123_v40 = vld [vmem:[#allocation6 + $0x38] sm:$0xff]  }
 0x37c   :  { %1989 = vmatpush3.bf16.msra.mxu1 %v2123_v40 }
 0x37d   :  { %v535_v53 = vmul.f32 %v534_v43, %v2853_v13  ;;  %1990 = vmatprep.subr.bf16.mxu1 %v2377_v0  ;;  %v2126_v43 = vld [vmem:[#allocation6 + $0x20] sm:$0xff]  }
 0x37f   :  { %v536_v54 = vadd.f32 %v535_v53, %v2861_v33  ;;  %v2128_v53 = vld [vmem:[#allocation6 + $0x10] sm:$0xff]  }
 0x380   :  { %v639_v55 = vpop.xlane.xlu0 %638  ;;  %1991 = vmatpush3.bf16.msra.mxu1 %v2124_v42 }
 0x381   :  { %v640_v56 = vmul.f32 0.03125, %v639_v55  ;;  %v537_v57 = vadd.f32 %v536_v54, %v462_v51  ;;  %1992 = vmatprep.subr.bf16.mxu1 %v2377_v0  ;;  %v2127_v51 = vld [vmem:[#allocation6 + $0x18] sm:$0xff]   ;;  %v2130_v54 = vld [vmem:[#allocation6] sm:$0xff]   ;;  %v939_v55 = vsub.s32 6, %v2609_v14 }
 0x383   :  { %v538_v60 = vmax.f32 %v537_v57, 0.0  ;;  %v645_v6 = vmul.f32 %v640_v56, %v640_v56  ;;  %v2918_v57 = vrot.slane %v2900_v11, %v939_v55 }
 0x384   :  { %v643_v62 = vpop.xlane.xlu0 %642  ;;  %1993 = vmatpush3.bf16.msra.mxu1 %v2125_v35 }
 0x385   :  { %v644_v24 = vmul.f32 0.03125, %v643_v62  ;;  %v773_v63 = vmax.f32 %v421_v16, %v538_v60  ;;  %1994 = vmatprep.subr.bf16.mxu1 %v2377_v0 }
 0x387   :  { %v646_v9 = vsub.f32 %v644_v24, %v645_v6  ;;  %775 = vst [vmem:[%s3010_s12] sm:$0xff] %v773_v63  ;;  %v810_v10 = vpack.c.bf16 %v773_v63, %v773_v63 }
 0x388   :  { %1995 = vmatpush3.bf16.msra.mxu1 %v2126_v43 }
 0x389   :  { %v647_v2 = vmax.f32 %v646_v9, 0.0  ;;  %924 = vmatmul.mubr.bf16.vlgmr.msra.gmra.mxu0 %v810_v10  ;;  %1996 = vmatprep.subr.bf16.mxu1 %v2377_v0 }
 0x38a   :  { %1088 = vmatpush1.bf16.msra.mxu0 %v2791_v19  ;;  %1119 = vmatprep.mubr.bf16.mxu0 %v2379_v50  ;;  %v648_v19 = vsub.f32 %v2813_v36, %v640_v56 }
 0x38b   :  { %v649_v25 = vadd.f32 1e-05, %v647_v2  ;;  %1089 = vmatprep.subr.bf16.mxu0 %v2794_v20 }
 0x38c   :  { %1997 = vmatpush3.bf16.msra.mxu1 %v2127_v51 }
 0x38d   :  { %2175 = vrsqrt.f32 %v649_v25  ;;  %1998 = vmatprep.subr.bf16.mxu1 %v2377_v0 }
 0x38e   :  { %1090 = vmatpush1.bf16.msra.mxu0 %v2796_v21 }
 0x38f   :  { %1091 = vmatprep.subr.bf16.mxu0 %v2798_v22 }
 0x390   :  { %1999 = vmatpush3.bf16.msra.mxu1 %v2128_v53 }
 0x391   :  { %2000 = vmatprep.subr.bf16.mxu1 %v2377_v0 }
 0x392   :  { %1092 = vmatpush1.bf16.msra.mxu0 %v2802_v23 }
 0x393   :  { %1093 = vmatprep.subr.bf16.mxu0 %v2805_v29 }
 0x394   :  { %2001 = vmatpush3.bf16.msra.mxu1 %v2129_v39 }
 0x395   :  { %2002 = vmatprep.subr.bf16.mxu1 %v2377_v0 }
 0x396   :  { %1094 = vmatpush1.bf16.msra.mxu0 %v2808_v32 }
 0x397   :  { %1095 = vmatprep.subr.bf16.mxu0 %v2811_v34 }
 0x398   :  { %2003 = vmatpush3.bf16.msra.mxu1 %v2130_v54 }
 0x399   :  { %2008 = vmatprep.subr.bf16.mxu1 %v2377_v0 }
 0x39a   :  { %v2176_v26 = vpop.eup %2175  ;;  %1096 = vmatpush1.bf16.msra.mxu0 %v2817_v38 }
 0x39b   :  { %1097 = vmatprep.subr.bf16.mxu0 %v2820_v41  ;;  %v651_v20 = vmul.f32 %v2176_v26, %v648_v19 }
 0x39d   :  { %v652_v21 = vmul.f32 %v651_v20, %v2853_v13 }
 0x39e   :  { %1098 = vmatpush1.bf16.msra.mxu0 %v2825_v44 }
 0x39f   :  { %1099 = vmatprep.subr.bf16.mxu0 %v2829_v46  ;;  %v653_v22 = vadd.f32 %v652_v21, %v2861_v33 }
 0x3a0   :  { %v756_v23 = vpop.xlane.xlu1 %755 }
 0x3a1   :  { %v757_v29 = vmul.f32 0.03125, %v756_v23  ;;  %v959_v23 = vrot.slane %v2900_v11, %v2695_v58 }
 0x3a2   :  { %1100 = vmatpush1.bf16.msra.mxu0 %v2831_v47 }
 0x3a3   :  { %1101 = vmatprep.subr.bf16.mxu0 %v2835_v48  ;;  %v762_v34 = vmul.f32 %v757_v29, %v757_v29  ;;  %v765_v44 = vsub.f32 %v2842_v52, %v757_v29  ;;  %v654_v48 = vadd.f32 %v653_v22, %v579_v28 }
 0x3a4   :  { %v760_v32 = vpop.xlane.xlu1 %759 }
 0x3a5   :  { %v761_v36 = vmul.f32 0.03125, %v760_v32  ;;  %v655_v37 = vmax.f32 %v654_v48, 0.0 }
 0x3a6   :  { %1102 = vmatpush1.bf16.msra.mxu0 %v2837_v49 }
 0x3a7   :  { %v763_v38 = vsub.f32 %v761_v36, %v762_v34  ;;  %v964_v34 = vrot.slane %v2900_v11, %v2698_v59 }
 0x3a9   :  { %v764_v41 = vmax.f32 %v763_v38, 0.0 }
 0x3ab   :  { %v766_v27 = vadd.f32 1e-05, %v764_v41 }
 0x3ad   :  { %2177 = vrsqrt.f32 %v766_v27 }
 0x3ba   :  { %v2178_v46 = vpop.eup %2177 }
 0x3bb   :  { %v768_v45 = vmul.f32 %v2178_v46, %v765_v44 }
 0x3bd   :  { %v769_v47 = vmul.f32 %v768_v45, %v2853_v13 }
 0x3bf   :  { %v770_v1 = vadd.f32 %v769_v47, %v2861_v33 }
 0x3c1   :  { %v771_v3 = vadd.f32 %v770_v1, %v696_v61 }
 0x3c3   :  { %v772_v49 = vmax.f32 %v771_v3, 0.0 }
 0x3c5   :  { %v774_v5 = vmax.f32 %v655_v37, %v772_v49 }
 0x3c7   :  { %776 = vst [vmem:[%s3010_s12 + $0x8] sm:$0xff] %v774_v5  ;;  %v1086_v52 = vpack.c.bf16 %v774_v5, %v774_v5 }
 0x3c9   :  { %1120 = vmatmul.mubr.bf16.vlgmr.msra.gmra.mxu0 %v1086_v52 }
 0x3ca   :  { %1354 = vmatprep.mubr.bf16.mxu0 %v2379_v50 }
 0x449   :  { %v925_v7 = vpop.f32.mrf.mxu0 }
 0x44a   :  { %v936_v8 = vadd.f32 %v935_v12, %v925_v7 }
 0x44b   :  { %v2904_v13 = vpop.f32.mrf.mxu0 }
 0x44c   :  { %942 = vadd.xlane.f32.xlu0 %v936_v8  ;;  %v945_v18 = vmul.f32 %v936_v8, %v936_v8 }
 0x44d   :  { %v929_v33 = vpop.f32.mrf.mxu0 }
 0x44e   :  { %946 = vadd.xlane.f32.xlu1 %v945_v18 }
 0x44f   :  { %v930_v30 = vpop.f32.mrf.mxu0 }
 0x489   :  { %v1121_v56 = vpop.f32.mrf.mxu0 }
 0x48a   :  { %v1128_v16 = vadd.f32 %v1121_v56, %v935_v12  ;;  %v2139_v56 = vld [vmem:[#allocation9 + $0x54] ss:$8 sps:$4 sm:$0xff]  }
 0x48b   :  { %v1123_v60 = vpop.f32.mrf.mxu0 }
 0x48c   :  { %v2921_v62 = vadd.f32 %v1123_v60, %v2918_v57  ;;  %1130 = vadd.xlane.f32.xlu0 %v1128_v16  ;;  %v1133_v6 = vmul.f32 %v1128_v16, %v1128_v16  ;;  %v2140_v60 = vld [vmem:[#allocation9 + $0x40] ss:$8 sps:$4 sm:$0xff]  }
 0x48d   :  { %v1125_v24 = vpop.f32.mrf.mxu0 }
 0x48e   :  { %1134 = vadd.xlane.f32.xlu1 %v1133_v6  ;;  %v2145_v6 = vld [vmem:[#allocation9 + $0x34] ss:$8 sps:$4 sm:$0xff]   ;;  %v2143_v24 = vld [vmem:[#allocation9 + $0x30] ss:$8 sps:$4 sm:$0xff]  }
 0x48f   :  { %v1126_v63 = vpop.f32.mrf.mxu0 }
 0x490   :  { %v2148_v63 = vld [vmem:[#allocation9 + $0x24] ss:$8 sps:$4 sm:$0xff]  }
 0x4d5   :  { %v943_v9 = vpop.xlane.xlu0 %942 }
 0x4d6   :  { %v944_v10 = vmul.f32 0.015625, %v943_v9  ;;  %v2146_v9 = vld [vmem:[#allocation9 + $0x20] ss:$8 sps:$4 sm:$0xff]  }
 0x4d7   :  { %v947_v2 = vpop.xlane.xlu1 %946 }
 0x4d8   :  { %v949_v25 = vmul.f32 %v944_v10, %v944_v10  ;;  %v948_v19 = vmul.f32 0.015625, %v947_v2  ;;  %v952_v22 = vsub.f32 %v936_v8, %v944_v10  ;;  %v971_v8 = vrot.slane %v2900_v11, %v2777_v31  ;;  %v2151_v10 = vld [vmem:[#allocation9 + $0x14] ss:$8 sps:$4 sm:$0xff]   ;;  %v2149_v2 = vld [vmem:[#allocation9 + $0x10] ss:$8 sps:$4 sm:$0xff]  }
 0x4da   :  { %v950_v26 = vsub.f32 %v948_v19, %v949_v25  ;;  %v2154_v25 = vld [vmem:[#allocation9 + $0x4] ss:$8 sps:$4 sm:$0xff]   ;;  %v2152_v19 = vld [vmem:[#allocation9] ss:$8 sps:$4 sm:$0xff]  }
 0x4dc   :  { %v951_v20 = vmax.f32 %v950_v26, 0.0 }
 0x4de   :  { %v953_v21 = vadd.f32 1e-05, %v951_v20 }
 0x4e0   :  { %2179 = vrsqrt.f32 %v953_v21 }
 0x4ed   :  { %v2180_v29 = vpop.eup %2179 }
 0x4ee   :  { %v955_v32 = vmul.f32 %v2180_v29, %v952_v22 }
 0x4f0   :  { %v960_v36 = vmul.f32 %v959_v23, %v955_v32 }
 0x4f2   :  { %v965_v38 = vadd.f32 %v964_v34, %v960_v36 }
 0x4f4   :  { %v966_v41 = vmax.f32 %v965_v38, 0.0 }
 0x4f6   :  { %v967_v27 = vpack.c.bf16 %v966_v41, %v966_v41 }
 0x4f8   :  { %2005 = vmatmul.mubr.bf16.vlgmr.msra.gmra.mxu1 %v967_v27 }
 0x4f9   :  { %2009 = vmatpush3.bf16.msra.mxu1 %v2123_v40  ;;  %2024 = vmatprep.mubr.msk.bf16.mxu1 %vm2378_vm0, %v2377_v0 }
 0x4fa   :  { %2010 = vmatprep.subr.bf16.mxu1 %v2377_v0 }
 0x4fd   :  { %2011 = vmatpush3.bf16.msra.mxu1 %v2124_v42 }
 0x4fe   :  { %2012 = vmatprep.subr.bf16.mxu1 %v2377_v0 }
 0x501   :  { %2013 = vmatpush3.bf16.msra.mxu1 %v2125_v35 }
 0x502   :  { %2014 = vmatprep.subr.bf16.mxu1 %v2377_v0 }
 0x505   :  { %2015 = vmatpush3.bf16.msra.mxu1 %v2126_v43  ;;  %v2133_v43 = vld [vmem:[#allocation9 + $0x74] ss:$8 sps:$4 sm:$0xff]  }
 0x506   :  { %2016 = vmatprep.subr.bf16.mxu1 %v2377_v0  ;;  %1322 = vmatprep.subr.bf16.mxu0 %v2133_v43 }
 0x509   :  { %2017 = vmatpush3.bf16.msra.mxu1 %v2127_v51  ;;  %v2131_v51 = vld [vmem:[#allocation9 + $0x70] ss:$8 sps:$4 sm:$0xff]  }
 0x50a   :  { %2018 = vmatprep.subr.bf16.mxu1 %v2377_v0  ;;  %1323 = vmatpush1.bf16.msra.mxu0 %v2131_v51 }
 0x50d   :  { %2019 = vmatpush3.bf16.msra.mxu1 %v2128_v53  ;;  %v2136_v53 = vld [vmem:[#allocation9 + $0x64] ss:$8 sps:$4 sm:$0xff]  }
 0x50e   :  { %2020 = vmatprep.subr.bf16.mxu1 %v2377_v0  ;;  %1324 = vmatprep.subr.bf16.mxu0 %v2136_v53 }
 0x511   :  { %2021 = vmatpush3.bf16.msra.mxu1 %v2129_v39  ;;  %v2134_v39 = vld [vmem:[#allocation9 + $0x60] ss:$8 sps:$4 sm:$0xff]  }
 0x512   :  { %2022 = vmatprep.subr.bf16.mxu1 %v2377_v0  ;;  %1325 = vmatpush1.bf16.msra.mxu0 %v2134_v39 }
 0x513   :  { %1326 = vmatprep.subr.bf16.mxu0 %v2139_v56 }
 0x515   :  { %v1131_v44 = vpop.xlane.xlu0 %1130  ;;  %2023 = vmatpush3.bf16.msra.mxu1 %v2130_v54  ;;  %v2137_v54 = vld [vmem:[#allocation9 + $0x50] ss:$8 sps:$4 sm:$0xff]  }
 0x516   :  { %v1132_v46 = vmul.f32 0.015625, %v1131_v44  ;;  %2028 = vmatprep.subr.bf16.mxu1 %v2377_v0  ;;  %1327 = vmatpush1.bf16.msra.mxu0 %v2137_v54 }
 0x517   :  { %v1135_v28 = vpop.xlane.xlu1 %1134 }
 0x518   :  { %v1137_v45 = vmul.f32 %v1132_v46, %v1132_v46  ;;  %v1136_v61 = vmul.f32 0.015625, %v1135_v28  ;;  %v1140_v3 = vsub.f32 %v1128_v16, %v1132_v46  ;;  %v2142_v16 = vld [vmem:[#allocation9 + $0x44] ss:$8 sps:$4 sm:$0xff]  }
 0x519   :  { %1328 = vmatprep.subr.bf16.mxu0 %v2142_v16 }
 0x51a   :  { %v1138_v47 = vsub.f32 %v1136_v61, %v1137_v45  ;;  %1329 = vmatpush1.bf16.msra.mxu0 %v2140_v60  ;;  %v1077_v45 = vrot.slane %v2900_v11, %v2848_v4 }
 0x51b   :  { %1330 = vmatprep.subr.bf16.mxu0 %v2145_v6 }
 0x51c   :  { %v1139_v48 = vmax.f32 %v1138_v47, 0.0 }
 0x51e   :  { %v1141_v1 = vadd.f32 1e-05, %v1139_v48  ;;  %1331 = vmatpush1.bf16.msra.mxu0 %v2143_v24  ;;  %v1082_v48 = vrot.slane %v2900_v11, %v2856_v17 }
 0x51f   :  { %1332 = vmatprep.subr.bf16.mxu0 %v2148_v63 }
 0x520   :  { %2181 = vrsqrt.f32 %v1141_v1 }
 0x522   :  { %1333 = vmatpush1.bf16.msra.mxu0 %v2146_v9 }
 0x523   :  { %1334 = vmatprep.subr.bf16.mxu0 %v2151_v10 }
 0x526   :  { %1335 = vmatpush1.bf16.msra.mxu0 %v2149_v2 }
 0x527   :  { %1336 = vmatprep.subr.bf16.mxu0 %v2154_v25 }
 0x52a   :  { %1337 = vmatpush1.bf16.msra.mxu0 %v2152_v19 }
 0x52b   :  { %1518 = vmatprep.subr.bf16.mxu0 %v2133_v43 }
 0x52d   :  { %v2182_v37 = vpop.eup %2181 }
 0x52e   :  { %v1143_v49 = vmul.f32 %v2182_v37, %v1140_v3  ;;  %v941_v3 = vadd.f32 %v2918_v57, %v2904_v13 }
 0x530   :  { %v1144_v5 = vmul.f32 %v1143_v49, %v959_v23 }
 0x532   :  { %v1145_v52 = vadd.f32 %v1144_v5, %v964_v34 }
 0x534   :  { %v1146_v12 = vmax.f32 %v1145_v52, 0.0 }
 0x536   :  { %v1147_v7 = vpack.c.bf16 %v1146_v12, %v1146_v12 }
 0x538   :  { %2025 = vmatmul.mubr.bf16.vlgmr.msra.gmra.mxu1 %v1147_v7 }
 0x539   :  { %2044 = vmatprep.mubr.msk.bf16.mxu1 %vm2378_vm0, %v2377_v0 }
 0x5b8   :  { %v1054_v18 = vpop.f32.mrf.mxu1 }
 0x5b9   :  { %v1055_v33 = vadd.f32 %v1054_v18, %v971_v8 }
 0x5ba   :  { %v2006_v30 = vpop.f32.mrf.mxu1 }
 0x5bb   :  { %1060 = vadd.xlane.f32.xlu0 %v1055_v33  ;;  %v1063_v40 = vmul.f32 %v1055_v33, %v1055_v33 }
 0x5bc   :  { %v1057_v42 = vpop.f32.mrf.mxu1 }
 0x5bd   :  { %1064 = vadd.xlane.f32.xlu1 %v1063_v40 }
 0x5be   :  { %v2007_v35 = vpop.f32.mrf.mxu1 }
 0x5f8   :  { %v1182_v26 = vpop.f32.mrf.mxu1 }
 0x5f9   :  { %v1183_v20 = vadd.f32 %v1182_v26, %v971_v8  ;;  %v2162_v26 = vld [vmem:[#allocation10] sm:$0xff]  }
 0x5fa   :  { %v2026_v21 = vpop.f32.mrf.mxu1 }
 0x5fb   :  { %1188 = vadd.xlane.f32.xlu0 %v1183_v20  ;;  %v1191_v22 = vmul.f32 %v1183_v20, %v1183_v20 }
 0x5fc   :  { %v1185_v23 = vpop.f32.mrf.mxu1 }
 0x5fd   :  { %1192 = vadd.xlane.f32.xlu1 %v1191_v22 }
 0x5fe   :  { %v2027_v29 = vpop.f32.mrf.mxu1 }
 0x644   :  { %v1061_v32 = vpop.xlane.xlu0 %1060 }
 0x645   :  { %v1062_v34 = vmul.f32 0.015625, %v1061_v32 }
 0x646   :  { %v1065_v36 = vpop.xlane.xlu1 %1064 }
 0x647   :  { %v1067_v38 = vmul.f32 %v1062_v34, %v1062_v34  ;;  %v1066_v41 = vmul.f32 0.015625, %v1065_v36  ;;  %v1070_v28 = vsub.f32 %v1055_v33, %v1062_v34 }
 0x649   :  { %v1068_v27 = vsub.f32 %v1066_v41, %v1067_v38 }
 0x64b   :  { %v1069_v44 = vmax.f32 %v1068_v27, 0.0 }
 0x64d   :  { %v1071_v46 = vadd.f32 1e-05, %v1069_v44 }
 0x64f   :  { %2183 = vrsqrt.f32 %v1071_v46 }
 0x65c   :  { %v2184_v61 = vpop.eup %2183 }
 0x65d   :  { %v1073_v47 = vmul.f32 %v2184_v61, %v1070_v28 }
 0x65f   :  { %v1078_v1 = vmul.f32 %v1077_v45, %v1073_v47 }
 0x661   :  { %v1083_v37 = vadd.f32 %v1082_v48, %v1078_v1 }
 0x663   :  { %v1084_v49 = vadd.f32 %v1083_v37, %v941_v3 }
 0x665   :  { %v1085_v5 = vmax.f32 %v1084_v49, 0.0 }
 0x667   :  { %1206 = vst [vmem:[%s3011_s13] sm:$0xff] %v1085_v5  ;;  %v1241_v52 = vpack.c.bf16 %v1085_v5, %v1085_v5 }
 0x669   :  { %1355 = vmatmul.mubr.bf16.vlgmr.msra.gmra.mxu0 %v1241_v52 }
 0x66a   :  { %1519 = vmatpush1.bf16.msra.mxu0 %v2131_v51  ;;  %1550 = vmatprep.mubr.bf16.mxu0 %v2379_v50 }
 0x66b   :  { %1520 = vmatprep.subr.bf16.mxu0 %v2136_v53 }
 0x66e   :  { %1521 = vmatpush1.bf16.msra.mxu0 %v2134_v39  ;;  %v2955_v39 = vld [vmem:[#allocation12] sm:$0xff] }
 0x66f   :  { %1522 = vmatprep.subr.bf16.mxu0 %v2139_v56  ;;  %v1390_v61 = vrot.slane %v2955_v39, %v2695_v58  ;;  %v1395_v1 = vrot.slane %v2955_v39, %v2698_v59 }
 0x672   :  { %1523 = vmatpush1.bf16.msra.mxu0 %v2137_v54  ;;  %v1366_v54 = vrot.slane %v2955_v39, %v2612_v15  ;;  %v2158_v15 = vld [vmem:[#allocation10 + $0x20] sm:$0xff]  }
 0x673   :  { %1524 = vmatprep.subr.bf16.mxu0 %v2142_v16 }
 0x676   :  { %1525 = vmatpush1.bf16.msra.mxu0 %v2140_v60 }
 0x677   :  { %1526 = vmatprep.subr.bf16.mxu0 %v2145_v6 }
 0x67a   :  { %1527 = vmatpush1.bf16.msra.mxu0 %v2143_v24 }
 0x67b   :  { %1528 = vmatprep.subr.bf16.mxu0 %v2148_v63  ;;  %v2155_v63 = vld [vmem:[#allocation10 + $0x38] sm:$0xff]  }
 0x67c   :  { %2029 = vmatpush3.bf16.msra.mxu1 %v2155_v63 }
 0x67d   :  { %2030 = vmatprep.subr.bf16.mxu1 %v2377_v0 }
 0x67e   :  { %1529 = vmatpush1.bf16.msra.mxu0 %v2146_v9  ;;  %v2156_v9 = vld [vmem:[#allocation10 + $0x30] sm:$0xff]  }
 0x67f   :  { %1530 = vmatprep.subr.bf16.mxu0 %v2151_v10  ;;  %v2157_v10 = vld [vmem:[#allocation10 + $0x28] sm:$0xff]  }
 0x680   :  { %2031 = vmatpush3.bf16.msra.mxu1 %v2156_v9 }
 0x681   :  { %2032 = vmatprep.subr.bf16.mxu1 %v2377_v0 }
 0x682   :  { %1531 = vmatpush1.bf16.msra.mxu0 %v2149_v2  ;;  %v2159_v2 = vld [vmem:[#allocation10 + $0x18] sm:$0xff]  }
 0x683   :  { %1532 = vmatprep.subr.bf16.mxu0 %v2154_v25  ;;  %v2160_v25 = vld [vmem:[#allocation10 + $0x10] sm:$0xff]  }
 0x684   :  { %v1189_v11 = vpop.xlane.xlu0 %1188  ;;  %2033 = vmatpush3.bf16.msra.mxu1 %v2157_v10 }
 0x685   :  { %v1190_v13 = vmul.f32 0.015625, %v1189_v11  ;;  %2034 = vmatprep.subr.bf16.mxu1 %v2377_v0 }
 0x686   :  { %v1193_v57 = vpop.xlane.xlu1 %1192  ;;  %1533 = vmatpush1.bf16.msra.mxu0 %v2152_v19  ;;  %v2161_v19 = vld [vmem:[#allocation10 + $0x8] sm:$0xff]  }
 0x687   :  { %v1195_v12 = vmul.f32 %v1190_v13, %v1190_v13  ;;  %v1194_v7 = vmul.f32 0.015625, %v1193_v57  ;;  %v1198_v33 = vsub.f32 %v1183_v20, %v1190_v13 }
 0x688   :  { %2035 = vmatpush3.bf16.msra.mxu1 %v2158_v15 }
 0x689   :  { %v1196_v50 = vsub.f32 %v1194_v7, %v1195_v12  ;;  %2036 = vmatprep.subr.bf16.mxu1 %v2377_v0 }
 0x68b   :  { %v1197_v8 = vmax.f32 %v1196_v50, 0.0 }
 0x68c   :  { %2037 = vmatpush3.bf16.msra.mxu1 %v2159_v2 }
 0x68d   :  { %v1199_v18 = vadd.f32 1e-05, %v1197_v8  ;;  %2038 = vmatprep.subr.bf16.mxu1 %v2377_v0 }
 0x68f   :  { %2185 = vrsqrt.f32 %v1199_v18 }
 0x690   :  { %2039 = vmatpush3.bf16.msra.mxu1 %v2160_v25 }
 0x691   :  { %2040 = vmatprep.subr.bf16.mxu1 %v2377_v0 }
 0x694   :  { %2041 = vmatpush3.bf16.msra.mxu1 %v2161_v19 }
 0x695   :  { %2042 = vmatprep.subr.bf16.mxu1 %v2377_v0 }
 0x698   :  { %2043 = vmatpush3.bf16.msra.mxu1 %v2162_v26 }
 0x699   :  { %2048 = vmatprep.subr.bf16.mxu1 %v2377_v0 }
 0x69c   :  { %v2186_v30 = vpop.eup %2185 }
 0x69d   :  { %v1201_v40 = vmul.f32 %v2186_v30, %v1198_v33 }
 0x69f   :  { %v1202_v42 = vmul.f32 %v1201_v40, %v1077_v45 }
 0x6a1   :  { %v1203_v35 = vadd.f32 %v1202_v42, %v1082_v48 }
 0x6a3   :  { %v1204_v43 = vadd.f32 %v1203_v35, %v2921_v62 }
 0x6a5   :  { %v1205_v51 = vmax.f32 %v1204_v43, 0.0 }
 0x6a7   :  { %1207 = vst [vmem:[%s3011_s13 + $0x8] sm:$0xff] %v1205_v51  ;;  %v1517_v53 = vpack.c.bf16 %v1205_v51, %v1205_v51 }
 0x6a9   :  { %1551 = vmatmul.mubr.bf16.vlgmr.msra.gmra.mxu0 %v1517_v53 }
 0x729   :  { %v1356_v56 = vpop.f32.mrf.mxu0 }
 0x72a   :  { %v1367_v16 = vadd.f32 %v1366_v54, %v1356_v56 }
 0x72b   :  { %v2959_v60 = vpop.f32.mrf.mxu0 }
 0x72c   :  { %1373 = vadd.xlane.f32.xlu0 %v1367_v16  ;;  %v1376_v6 = vmul.f32 %v1367_v16, %v1367_v16 }
 0x72d   :  { %v1360_v24 = vpop.f32.mrf.mxu0 }
 0x72e   :  { %1377 = vadd.xlane.f32.xlu1 %v1376_v6 }
 0x72f   :  { %v1361_v62 = vpop.f32.mrf.mxu0 }
 0x769   :  { %v1552_v20 = vpop.f32.mrf.mxu0 }
 0x76a   :  { %v1559_v21 = vadd.f32 %v1552_v20, %v1366_v54 }
 0x76b   :  { %v2969_v22 = vpop.f32.mrf.mxu0 }
 0x76c   :  { %1561 = vadd.xlane.f32.xlu0 %v1559_v21  ;;  %v1564_v23 = vmul.f32 %v1559_v21, %v1559_v21 }
 0x76d   :  { %v1556_v29 = vpop.f32.mrf.mxu0 }
 0x76e   :  { %1565 = vadd.xlane.f32.xlu1 %v1564_v23 }
 0x76f   :  { %v1557_v32 = vpop.f32.mrf.mxu0 }
 0x7b5   :  { %v1374_v34 = vpop.xlane.xlu0 %1373 }
 0x7b6   :  { %v1375_v36 = vmul.f32 0.03125, %v1374_v34 }
 0x7b7   :  { %v1378_v38 = vpop.xlane.xlu1 %1377 }
 0x7b8   :  { %v1380_v41 = vmul.f32 %v1375_v36, %v1375_v36  ;;  %v1379_v27 = vmul.f32 0.03125, %v1378_v38  ;;  %v1383_v45 = vsub.f32 %v1367_v16, %v1375_v36 }
 0x7ba   :  { %v1381_v44 = vsub.f32 %v1379_v27, %v1380_v41 }
 0x7bc   :  { %v1382_v46 = vmax.f32 %v1381_v44, 0.0 }
 0x7be   :  { %v1384_v28 = vadd.f32 1e-05, %v1382_v46  ;;  %v1508_v46 = vrot.slane %v2955_v39, %v2848_v4 }
 0x7c0   :  { %2187 = vrsqrt.f32 %v1384_v28 }
 0x7cd   :  { %v2188_v47 = vpop.eup %2187 }
 0x7ce   :  { %v1386_v48 = vmul.f32 %v2188_v47, %v1383_v45  ;;  %v1513_v45 = vrot.slane %v2955_v39, %v2856_v17  ;;  %v1371_v47 = vrot.slane %v2955_v39, %v939_v55 }
 0x7d0   :  { %v1391_v3 = vmul.f32 %v1390_v61, %v1386_v48 }
 0x7d2   :  { %v1396_v37 = vadd.f32 %v1395_v1, %v1391_v3 }
 0x7d4   :  { %v1397_v49 = vmax.f32 %v1396_v37, 0.0 }
 0x7d6   :  { %v1398_v5 = vpack.c.bf16 %v1397_v49, %v1397_v49  ;;  %v1372_v49 = vadd.f32 %v1371_v47, %v2959_v60 }
 0x7d8   :  { %2045 = vmatmul.mubr.bf16.vlgmr.msra.gmra.mxu1 %v1398_v5 }
 0x7d9   :  { %2049 = vmatpush3.bf16.msra.mxu1 %v2155_v63  ;;  %2064 = vmatprep.mubr.msk.bf16.mxu1 %vm2378_vm0, %v2377_v0 }
 0x7da   :  { %2050 = vmatprep.subr.bf16.mxu1 %v2377_v0 }
 0x7dd   :  { %2051 = vmatpush3.bf16.msra.mxu1 %v2156_v9 }
 0x7de   :  { %2052 = vmatprep.subr.bf16.mxu1 %v2377_v0 }
 0x7e1   :  { %2053 = vmatpush3.bf16.msra.mxu1 %v2157_v10 }
 0x7e2   :  { %2054 = vmatprep.subr.bf16.mxu1 %v2377_v0 }
 0x7e5   :  { %2055 = vmatpush3.bf16.msra.mxu1 %v2158_v15 }
 0x7e6   :  { %2056 = vmatprep.subr.bf16.mxu1 %v2377_v0 }
 0x7e9   :  { %2057 = vmatpush3.bf16.msra.mxu1 %v2159_v2 }
 0x7ea   :  { %2058 = vmatprep.subr.bf16.mxu1 %v2377_v0 }
 0x7ed   :  { %2059 = vmatpush3.bf16.msra.mxu1 %v2160_v25 }
 0x7ee   :  { %2060 = vmatprep.subr.bf16.mxu1 %v2377_v0 }
 0x7f1   :  { %2061 = vmatpush3.bf16.msra.mxu1 %v2161_v19 }
 0x7f2   :  { %2062 = vmatprep.subr.bf16.mxu1 %v2377_v0  ;;  %v1402_v0 = vrot.slane %v2955_v39, %v2777_v31 }
 0x7f5   :  { %v1562_v58 = vpop.xlane.xlu0 %1561  ;;  %2063 = vmatpush3.bf16.msra.mxu1 %v2162_v26 }
 0x7f6   :  { %v1563_v59 = vmul.f32 0.03125, %v1562_v58  ;;  %v1560_v58 = vadd.f32 %v2969_v22, %v1371_v47 }
 0x7f7   :  { %v1566_v52 = vpop.xlane.xlu1 %1565 }
 0x7f8   :  { %v1568_v11 = vmul.f32 %v1563_v59, %v1563_v59  ;;  %v1567_v13 = vmul.f32 0.03125, %v1566_v52  ;;  %v1571_v50 = vsub.f32 %v1559_v21, %v1563_v59 }
 0x7fa   :  { %v1569_v57 = vsub.f32 %v1567_v13, %v1568_v11 }
 0x7fc   :  { %v1570_v12 = vmax.f32 %v1569_v57, 0.0 }
 0x7fe   :  { %v1572_v7 = vadd.f32 1e-05, %v1570_v12 }
 0x800   :  { %2189 = vrsqrt.f32 %v1572_v7 }
 0x80d   :  { %v2190_v8 = vpop.eup %2189 }
 0x80e   :  { %v1574_v18 = vmul.f32 %v2190_v8, %v1571_v50 }
 0x810   :  { %v1575_v33 = vmul.f32 %v1574_v18, %v1390_v61 }
 0x812   :  { %v1576_v30 = vadd.f32 %v1575_v33, %v1395_v1 }
 0x814   :  { %v1577_v40 = vmax.f32 %v1576_v30, 0.0 }
 0x816   :  { %v1578_v42 = vpack.c.bf16 %v1577_v40, %v1577_v40 }
 0x818   :  { %2065 = vmatmul.mubr.bf16.vlgmr.msra.gmra.mxu1 %v1578_v42 }
 0x898   :  { %v1485_v35 = vpop.f32.mrf.mxu1 }
 0x899   :  { %v1486_v43 = vadd.f32 %v1485_v35, %v1402_v0 }
 0x89a   :  { %v2046_v51 = vpop.f32.mrf.mxu1 }
 0x89b   :  { %1491 = vadd.xlane.f32.xlu0 %v1486_v43  ;;  %v1494_v54 = vmul.f32 %v1486_v43, %v1486_v43 }
 0x89c   :  { %v1488_v53 = vpop.f32.mrf.mxu1 }
 0x89e   :  { %v2047_v56 = vpop.f32.mrf.mxu1 }
 0x89f   :  { %1495 = vadd.xlane.f32.xlu0 %v1494_v54 }
 0x8d8   :  { %v1613_v16 = vpop.f32.mrf.mxu1 }
 0x8d9   :  { %v1614_v6 = vadd.f32 %v1613_v16, %v1402_v0 }
 0x8da   :  { %v2066_v24 = vpop.f32.mrf.mxu1 }
 0x8db   :  { %1619 = vadd.xlane.f32.xlu1 %v1614_v6  ;;  %v1622_v63 = vmul.f32 %v1614_v6, %v1614_v6 }
 0x8dc   :  { %v1616_v62 = vpop.f32.mrf.mxu1 }
 0x8de   :  { %v2067_v9 = vpop.f32.mrf.mxu1 }
 0x8df   :  { %1623 = vadd.xlane.f32.xlu1 %v1622_v63 }
 0x924   :  { %v1492_v10 = vpop.xlane.xlu0 %1491 }
 0x925   :  { %v1493_v2 = vmul.f32 0.03125, %v1492_v10 }
 0x927   :  { %v1498_v25 = vmul.f32 %v1493_v2, %v1493_v2  ;;  %v1501_v44 = vsub.f32 %v1486_v43, %v1493_v2 }
 0x928   :  { %v1496_v15 = vpop.xlane.xlu0 %1495 }
 0x929   :  { %v1497_v31 = vmul.f32 0.03125, %v1496_v15 }
 0x92b   :  { %v1499_v19 = vsub.f32 %v1497_v31, %v1498_v25 }
 0x92d   :  { %v1500_v26 = vmax.f32 %v1499_v19, 0.0 }
 0x92f   :  { %v1502_v20 = vadd.f32 1e-05, %v1500_v26 }
 0x931   :  { %2191 = vrsqrt.f32 %v1502_v20 }
 0x93e   :  { %v2192_v27 = vpop.eup %2191 }
 0x93f   :  { %v1504_v28 = vmul.f32 %v2192_v27, %v1501_v44 }
 0x941   :  { %v1509_v61 = vmul.f32 %v1508_v46, %v1504_v28 }
 0x943   :  { %v1514_v3 = vadd.f32 %v1513_v45, %v1509_v61 }
 0x945   :  { %v1515_v59 = vadd.f32 %v1514_v3, %v1372_v49 }
 0x947   :  { %v1516_v11 = vmax.f32 %v1515_v59, 0.0 }
 0x964   :  { %v1620_v21 = vpop.xlane.xlu1 %1619 }
 0x965   :  { %v1621_v23 = vmul.f32 0.03125, %v1620_v21 }
 0x967   :  { %v1626_v32 = vmul.f32 %v1621_v23, %v1621_v23  ;;  %v1629_v48 = vsub.f32 %v1614_v6, %v1621_v23 }
 0x968   :  { %v1624_v29 = vpop.xlane.xlu1 %1623 }
 0x969   :  { %v1625_v34 = vmul.f32 0.03125, %v1624_v29 }
 0x96b   :  { %v1627_v36 = vsub.f32 %v1625_v34, %v1626_v32 }
 0x96d   :  { %v1628_v38 = vmax.f32 %v1627_v36, 0.0 }
 0x96f   :  { %v1630_v41 = vadd.f32 1e-05, %v1628_v38 }
 0x971   :  { %2193 = vrsqrt.f32 %v1630_v41 }
 0x97e   :  { %v2194_v1 = vpop.eup %2193 }
 0x97f   :  { %v1632_v37 = vmul.f32 %v2194_v1, %v1629_v48 }
 0x981   :  { %v1633_v5 = vmul.f32 %v1632_v37, %v1508_v46 }
 0x983   :  { %v1634_v4 = vadd.f32 %v1633_v5, %v1513_v45 }
 0x985   :  { %v1635_v52 = vadd.f32 %v1634_v4, %v1560_v58 }
 0x987   :  { %v1636_v13 = vmax.f32 %v1635_v52, 0.0 }
 0x989   :  { %v1637_v17 = vmax.f32 %v1516_v11, %v1636_v13 }
 0x98b   :  { %1638 = vst [vmem:[%s3012_s14] sm:$0xff] %v1637_v17 }
 0x98c   :  { %1651 = vsyncpa [#allocation3], 1 }
 0x98d   :  { %1652 = vsyncpa [#allocation5], 1 }
 0x98e   :  { %1653 = vsyncpa [#allocation8], 1 }
 0x98f   :  { %1654 = vsyncpa [#allocation11], 1 }
 0x990   :  { %1655 = vsyncpa [#allocation14], 1 }

</bundles_post_ra>
